<compile_context>
chip_gen: v7x
topology: tpu7x:2x2x1
jax: 0.10.0
libtpu: 0.0.40
codegen_flags: <defaults>
</compile_context>

<pallas_src>
import math
import functools

import jax
import jax.numpy as jnp
from jax.experimental import pallas as pl
from jax.experimental.pallas import tpu as pltpu

LN_EPS = 1e-5  # nn.LayerNorm default eps


# ----------------------------------------------------------------------------- helpers
def _erf(x):
    # Abramowitz & Stegun 7.1.26 polynomial (max abs err ~1.5e-7). Exact-erf GELU parity.
    a1, a2, a3, a4, a5 = (0.254829592, -0.284496736, 1.421413741,
                          -1.453152027, 1.061405429)
    p = 0.3275911
    ax = jnp.abs(x)
    t = 1.0 / (1.0 + p * ax)
    poly = ((((a5 * t + a4) * t + a3) * t + a2) * t + a1) * t
    y = 1.0 - poly * jnp.exp(-ax * ax)
    return jnp.where(x >= 0, y, -y)


def _gelu_exact(x):
    # nn.GELU() default (erf form)
    return 0.5 * x * (1.0 + _erf(x * (1.0 / math.sqrt(2.0))))


def _layer_norm(v, g, b):
    mu = jnp.mean(v, axis=-1, keepdims=True)
    var = jnp.mean((v - mu) ** 2, axis=-1, keepdims=True)
    return (v - mu) * jax.lax.rsqrt(var + LN_EPS) * g + b


# ----------------------------------------------------------------------------- kernel
def decoder_stack_kernel(num_heads, matmul_dtype,
                         x_ref, ln_g_ref, ln_b_ref,
                         wqkv_ref, bqkv_ref, wo_ref, bo_ref,
                         w1_ref, b1_ref, w2_ref, b2_ref,
                         scale_ref, out_ref, acc_ref):
    layer = pl.program_id(1)
    last_layer = pl.num_programs(1) - 1

    # Load the input activations into the carried f32 accumulator once per batch tile.
    @pl.when(layer == 0)
    def _():
        acc_ref[...] = x_ref[...].astype(jnp.float32)

    bt, seq, hidden = acc_ref.shape
    head_dim = hidden // num_heads
    inv_sqrt_d = 1.0 / math.sqrt(head_dim)

    g = ln_g_ref[...]           # (1, H) shared LayerNorm gamma
    b = ln_b_ref[...]           # (1, H) shared LayerNorm beta
    scale = scale_ref[0]        # re_zero residual scale (scalar, SMEM)

    def mm(a, w):
        # Optional bf16 MXU path (v6e/v7x); accumulation stays f32.
        if matmul_dtype is not None:
            a = a.astype(matmul_dtype)
            w = w.astype(matmul_dtype)
        return jnp.dot(a, w, preferred_element_type=jnp.float32)

    # Flatten (bt, S, H) -> (bt*S, H): fills the MXU M dim for all projections/FFN.
    x2 = acc_ref[...].reshape(bt * seq, hidden)

    # ---- masked multi-head self-attention block ------------------------------
    res = _layer_norm(x2, g, b)
    qkv = mm(res, wqkv_ref[0]) + bqkv_ref[0]                   # fused QKV: (M, 3H)
    q = qkv[:, :hidden].reshape(bt, seq, hidden)
    k = qkv[:, hidden:2 * hidden].reshape(bt, seq, hidden)
    v = qkv[:, 2 * hidden:].reshape(bt, seq, hidden)

    # Causal bias built in-kernel (cheap iota/compare), matches torch.triu(-1e9, diag=1).
    rows = jax.lax.broadcasted_iota(jnp.int32, (seq, seq), 0)
    cols = jax.lax.broadcasted_iota(jnp.int32, (seq, seq), 1)
    causal_bias = jnp.where(cols > rows, jnp.float32(-1e9), jnp.float32(0.0))

    head_outs = []
    for h in range(num_heads):                                 # static loop over heads
        sl = slice(h * head_dim, (h + 1) * head_dim)
        qh, kh, vh = q[:, :, sl], k[:, :, sl], v[:, :, sl]
        if matmul_dtype is not None:
            qh = qh.astype(matmul_dtype)
            kh = kh.astype(matmul_dtype)
        logits = jnp.einsum('bqd,bkd->bqk', qh, kh,
                            preferred_element_type=jnp.float32) * inv_sqrt_d
        logits = logits + causal_bias
        m = jnp.max(logits, axis=-1, keepdims=True)
        p = jnp.exp(logits - m)
        denom = jnp.sum(p, axis=-1, keepdims=True)
        attn = p * pl.reciprocal(denom, approx=True)           # EUP reciprocal
        if matmul_dtype is not None:
            attn = attn.astype(matmul_dtype)
            vh = vh.astype(matmul_dtype)
        head_outs.append(jnp.einsum('bqk,bkd->bqd', attn, vh,
                                    preferred_element_type=jnp.float32))
    vals = jnp.concatenate(head_outs, axis=-1).reshape(bt * seq, hidden)
    o = mm(vals, wo_ref[0]) + bo_ref[0]
    x2 = x2 + o * scale                                        # re_zero residual (dropout = id)

    # ---- feed-forward block --------------------------------------------------
    res = _layer_norm(x2, g, b)
    h1 = _gelu_exact(mm(res, w1_ref[0]) + b1_ref[0])
    h2 = mm(h1, w2_ref[0]) + b2_ref[0]
    x2 = x2 + h2 * scale

    # Carry activations for the next layer iteration.
    acc_ref[...] = x2.reshape(bt, seq, hidden)

    # Fold the final LayerNorm into the last layer; output written once per batch tile.
    @pl.when(layer == last_layer)
    def _():
        y = _layer_norm(x2, g, b).reshape(bt, seq, hidden)
        out_ref[...] = y.astype(out_ref.dtype)


# ----------------------------------------------------------------------------- wrapper
def transformer_decoder_forward(inputs, params, num_heads, *,
                                batch_tile=None, matmul_dtype=None):
    """Pallas equivalent of TransformerDecoder.forward (no context, no cache)."""
    B, S, H = inputs.shape
    L = params["wqkv"].shape[0]
    Fc = params["w1"].shape[-1]
    bt = B if batch_tile is None else batch_tile
    assert B % bt == 0
    nbt = B // bt

    def _wspec(shape):
        # per-layer weight slab: leading layer axis indexed by grid axis 1
        return pl.BlockSpec((1,) + shape, lambda bi, li, s=shape: (li,) + (0,) * len(s))

    in_specs = [
        pl.BlockSpec((bt, S, H), lambda bi, li: (bi, 0, 0)),    # activations (read at layer 0)
        pl.BlockSpec((1, H), lambda bi, li: (0, 0)),            # shared LN gamma
        pl.BlockSpec((1, H), lambda bi, li: (0, 0)),            # shared LN beta
        _wspec((H, 3 * H)), _wspec((1, 3 * H)),                 # fused QKV weight / bias
        _wspec((H, H)), _wspec((1, H)),                         # o_proj
        _wspec((H, Fc)), _wspec((1, Fc)),                       # fc1
        _wspec((Fc, H)), _wspec((1, H)),                        # fc2
        pl.BlockSpec(memory_space=pltpu.MemorySpace.SMEM),      # re_zero scale
    ]
    out_spec = pl.BlockSpec((bt, S, H), lambda bi, li: (bi, 0, 0))

    kernel = functools.partial(decoder_stack_kernel, num_heads, matmul_dtype)

    return pl.pallas_call(
        kernel,
        out_shape=jax.ShapeDtypeStruct((B, S, H), inputs.dtype),
        grid=(nbt, L),
        in_specs=in_specs,
        out_specs=out_spec,
        scratch_shapes=[pltpu.VMEM((bt, S, H), jnp.float32)],   # carried activations
        compiler_params=pltpu.CompilerParams(
            # batch tiles are independent (megacore-parallel); layer axis carries state
            dimension_semantics=("parallel", "arbitrary"),
            # raise scoped VMEM (v5e default is 16 MiB); stays within v7x's 64 MiB physical
            vmem_limit_bytes=64 * 1024 * 1024),
    )(inputs, params["ln_g"], params["ln_b"],
      params["wqkv"], params["bqkv"], params["wo"], params["bo"],
      params["w1"], params["b1"], params["w2"], params["b2"],
      params["scale"])


# ----------------------------------------------------------------------------- params
def init_params(key, hidden, fc_size, num_layers):
    def lin(k, fan_in, fan_out):
        wkey, bkey = jax.random.split(k)
        # kaiming_normal_(mode='fan_out', relu) -> std = sqrt(2 / fan_out); bias std 1e-6
        w = jax.random.normal(wkey, (fan_in, fan_out), jnp.float32) * math.sqrt(2.0 / fan_out)
        b = jax.random.normal(bkey, (1, fan_out), jnp.float32) * 1e-6
        return w, b

    wqkv, bqkv, wo, bo, w1, b1, w2, b2 = ([] for _ in range(8))
    for _ in range(num_layers):
        key, *ks = jax.random.split(key, 7)
        wq, bqv = lin(ks[0], hidden, hidden)
        wk, bkv = lin(ks[1], hidden, hidden)
        wv, bvv = lin(ks[2], hidden, hidden)
        wqkv.append(jnp.concatenate([wq, wk, wv], axis=1))      # fused (H, 3H)
        bqkv.append(jnp.concatenate([bqv, bkv, bvv], axis=1))   # fused (1, 3H)
        w, b = lin(ks[3], hidden, hidden); wo.append(w); bo.append(b)
        w, b = lin(ks[4], hidden, fc_size); w1.append(w); b1.append(b)
        w, b = lin(ks[5], fc_size, hidden); w2.append(w); b2.append(b)

    stack = lambda xs: jnp.stack(xs, axis=0)
    return {
        "wqkv": stack(wqkv), "bqkv": stack(bqkv),
        "wo": stack(wo), "bo": stack(bo),
        "w1": stack(w1), "b1": stack(b1),
        "w2": stack(w2), "b2": stack(b2),
        "ln_g": jnp.ones((1, hidden), jnp.float32),   # shared nn.LayerNorm weight
        "ln_b": jnp.zeros((1, hidden), jnp.float32),  # shared nn.LayerNorm bias
        # re_zero `context_scale` is initialized to 0.0 in the PyTorch module (all
        # residual branches no-ops); use 0.1 here so the attention/MLP path is exercised.
        "scale": jnp.array([0.1], dtype=jnp.float32),
    }


# ----------------------------------------------------------------------------- reference
def ref_forward(inputs, params, num_heads):
    B, S, H = inputs.shape
    nh = num_heads
    hd = H // nh
    bias = jnp.triu(jnp.full((S, S), -1e9, jnp.float32), k=1)
    g, b = params["ln_g"], params["ln_b"]
    scale = params["scale"][0]
    hi = jax.lax.Precision.HIGHEST

    def ln(v):
        mu = v.mean(-1, keepdims=True)
        var = ((v - mu) ** 2).mean(-1, keepdims=True)
        return (v - mu) / jnp.sqrt(var + LN_EPS) * g + b

    x = inputs
    L = params["wqkv"].shape[0]
    for i in range(L):
        wqkv, bqkv = params["wqkv"][i], params["bqkv"][i]
        wq, wk, wv = wqkv[:, :H], wqkv[:, H:2 * H], wqkv[:, 2 * H:]
        bq, bk, bv = bqkv[:, :H], bqkv[:, H:2 * H], bqkv[:, 2 * H:]
        res = ln(x)
        q = jnp.matmul(res, wq, precision=hi) + bq
        k = jnp.matmul(res, wk, precision=hi) + bk
        v = jnp.matmul(res, wv, precision=hi) + bv
        q = q.reshape(B, S, nh, hd).transpose(0, 2, 1, 3)
        k = k.reshape(B, S, nh, hd).transpose(0, 2, 1, 3)
        v = v.reshape(B, S, nh, hd).transpose(0, 2, 1, 3)
        logits = jnp.einsum("bhqd,bhkd->bhqk", q, k, precision=hi) / math.sqrt(hd) + bias
        attn = jax.nn.softmax(logits, axis=-1)
        vals = jnp.einsum("bhqk,bhkd->bhqd", attn, v, precision=hi)
        vals = vals.transpose(0, 2, 1, 3).reshape(B, S, H)
        o = jnp.matmul(vals, params["wo"][i], precision=hi) + params["bo"][i]
        x = x + o * scale
        res = ln(x)
        h1 = jax.nn.gelu(jnp.matmul(res, params["w1"][i], precision=hi) + params["b1"][i],
                         approximate=False)
        x = x + (jnp.matmul(h1, params["w2"][i], precision=hi) + params["b2"][i]) * scale
    return ln(x)


# ----------------------------------------------------------------------------- main
if __name__ == "__main__":
    BATCH, SEQ, HIDDEN, FC, HEADS, LAYERS = 2, 8, 32, 64, 4, 2

    key = jax.random.PRNGKey(0)
    pkey, xkey = jax.random.split(key)
    params = init_params(pkey, HIDDEN, FC, LAYERS)
    inputs = jax.random.normal(xkey, (BATCH, SEQ, HIDDEN), jnp.float32)

    # matmul_dtype=jnp.bfloat16 is the recommended setting on v6e/v7x; kept f32 here
    # so the check against the f32 reference stays tight.
    out = transformer_decoder_forward(inputs, params, HEADS, matmul_dtype=None)
    out = jax.block_until_ready(out)

    ref = jax.block_until_ready(ref_forward(inputs, params, HEADS))

    assert out.shape == (BATCH, SEQ, HIDDEN), out.shape
    max_err = float(jnp.max(jnp.abs(out - ref)))
    assert jnp.allclose(out, ref, atol=2e-3, rtol=2e-3), max_err

    print("KERNEL_OK")
</pallas_src>

<mosaic_0001>
module attributes {stable_mosaic.version = 11 : i64} {
  func.func @decoder_stack_kernel(%arg0: i32, %arg1: i32, %arg2: memref<2x8x32xf32, #tpu.memory_space<vmem>>, %arg3: memref<1x32xf32, #tpu.memory_space<vmem>>, %arg4: memref<1x32xf32, #tpu.memory_space<vmem>>, %arg5: memref<1x32x96xf32, #tpu.memory_space<vmem>>, %arg6: memref<1x1x96xf32, #tpu.memory_space<vmem>>, %arg7: memref<1x32x32xf32, #tpu.memory_space<vmem>>, %arg8: memref<1x1x32xf32, #tpu.memory_space<vmem>>, %arg9: memref<1x32x64xf32, #tpu.memory_space<vmem>>, %arg10: memref<1x1x64xf32, #tpu.memory_space<vmem>>, %arg11: memref<1x64x32xf32, #tpu.memory_space<vmem>>, %arg12: memref<1x1x32xf32, #tpu.memory_space<vmem>>, %arg13: memref<1xf32, #tpu.memory_space<smem>>, %arg14: memref<2x8x32xf32, #tpu.memory_space<vmem>>, %arg15: memref<2x8x32xf32, #tpu.memory_space<vmem>>) attributes {dimension_semantics = [#tpu.dimension_semantics<parallel>, #tpu.dimension_semantics<arbitrary>], iteration_bounds = array<i64: 1, 2>, scalar_prefetch = 0 : i64, scratch_operands = 1 : i64, tpu.core_type = #tpu.core_type<tc>, window_params = [{transform_indices = @transform_0, window_bounds = array<i64: 2, 8, 32>}, {pipeline_mode = #tpu.pipeline_mode<synchronous>, transform_indices = @transform_1, window_bounds = array<i64: 1, 32>}, {pipeline_mode = #tpu.pipeline_mode<synchronous>, transform_indices = @transform_2, window_bounds = array<i64: 1, 32>}, {transform_indices = @transform_3, window_bounds = array<i64: 1, 32, 96>}, {transform_indices = @transform_4, window_bounds = array<i64: 1, 1, 96>}, {transform_indices = @transform_5, window_bounds = array<i64: 1, 32, 32>}, {transform_indices = @transform_6, window_bounds = array<i64: 1, 1, 32>}, {transform_indices = @transform_7, window_bounds = array<i64: 1, 32, 64>}, {transform_indices = @transform_8, window_bounds = array<i64: 1, 1, 64>}, {transform_indices = @transform_9, window_bounds = array<i64: 1, 64, 32>}, {transform_indices = @transform_10, window_bounds = array<i64: 1, 1, 32>}, {transform_indices = @transform_11, window_bounds = array<i64: 1>}, {transform_indices = @transform_12, window_bounds = array<i64: 2, 8, 32>}]} {
    %c0_i32 = arith.constant 0 : i32
    %0 = arith.cmpi eq, %arg1, %c0_i32 : i32
    %1 = arith.extui %0 : i1 to i32
    %c0_i32_0 = arith.constant 0 : i32
    %2 = arith.cmpi ne, %1, %c0_i32_0 : i32
    scf.if %2 {
      %c0_86 = arith.constant 0 : index
      %c0_87 = arith.constant 0 : index
      %c0_88 = arith.constant 0 : index
      %225 = vector.load %arg2[%c0_86, %c0_87, %c0_88] : memref<2x8x32xf32, #tpu.memory_space<vmem>>, vector<2x8x32xf32>
      %c0_89 = arith.constant 0 : index
      %c0_90 = arith.constant 0 : index
      %c0_91 = arith.constant 0 : index
      %226 = vector.load %arg15[%c0_89, %c0_90, %c0_91] : memref<2x8x32xf32, #tpu.memory_space<vmem>>, vector<2x8x32xf32>
      tpu.vector_store %arg15[%c0_89, %c0_90, %c0_91], %225 {strides = array<i32>} : memref<2x8x32xf32, #tpu.memory_space<vmem>>, vector<2x8x32xf32>,
    } else {
    }
    %c0 = arith.constant 0 : index
    %c0_1 = arith.constant 0 : index
    %3 = vector.load %arg3[%c0, %c0_1] : memref<1x32xf32, #tpu.memory_space<vmem>>, vector<1x32xf32>
    %c0_2 = arith.constant 0 : index
    %c0_3 = arith.constant 0 : index
    %4 = vector.load %arg4[%c0_2, %c0_3] : memref<1x32xf32, #tpu.memory_space<vmem>>, vector<1x32xf32>
    %c0_4 = arith.constant 0 : index
    %5 = memref.load %arg13[%c0_4] : memref<1xf32, #tpu.memory_space<smem>>
    %c0_5 = arith.constant 0 : index
    %c0_6 = arith.constant 0 : index
    %c0_7 = arith.constant 0 : index
    %6 = vector.load %arg15[%c0_5, %c0_6, %c0_7] : memref<2x8x32xf32, #tpu.memory_space<vmem>>, vector<2x8x32xf32>
    %7 = vector.shape_cast %6 : vector<2x8x32xf32> to vector<16x32xf32>
    %cst = arith.constant dense<0.000000e+00> : vector<16xf32>
    %8 = vector.multi_reduction <add>, %7, %cst [1] : vector<16x32xf32> to vector<16xf32>
    %9 = vector.shape_cast %8 : vector<16xf32> to vector<16x1xf32>
    %cst_8 = arith.constant 3.200000e+01 : f32
    %10 = vector.broadcast %cst_8 : f32 to vector<16x1xf32>
    %11 = arith.divf %9, %10 : vector<16x1xf32>
    %12 = vector.broadcast %11 : vector<16x1xf32> to vector<16x32xf32>
    %13 = arith.subf %7, %12 : vector<16x32xf32>
    %14 = arith.mulf %13, %13 : vector<16x32xf32>
    %cst_9 = arith.constant dense<0.000000e+00> : vector<16xf32>
    %15 = vector.multi_reduction <add>, %14, %cst_9 [1] : vector<16x32xf32> to vector<16xf32>
    %16 = vector.shape_cast %15 : vector<16xf32> to vector<16x1xf32>
    %cst_10 = arith.constant 3.200000e+01 : f32
    %17 = vector.broadcast %cst_10 : f32 to vector<16x1xf32>
    %18 = arith.divf %16, %17 : vector<16x1xf32>
    %19 = vector.broadcast %11 : vector<16x1xf32> to vector<16x32xf32>
    %20 = arith.subf %7, %19 : vector<16x32xf32>
    %cst_11 = arith.constant 9.99999974E-6 : f32
    %21 = vector.broadcast %cst_11 : f32 to vector<16x1xf32>
    %22 = arith.addf %18, %21 : vector<16x1xf32>
    %23 = math.rsqrt %22 : vector<16x1xf32>
    %24 = vector.broadcast %23 : vector<16x1xf32> to vector<16x32xf32>
    %25 = arith.mulf %20, %24 : vector<16x32xf32>
    %26 = vector.broadcast %3 : vector<1x32xf32> to vector<16x32xf32>
    %27 = arith.mulf %25, %26 : vector<16x32xf32>
    %28 = vector.broadcast %4 : vector<1x32xf32> to vector<16x32xf32>
    %29 = arith.addf %27, %28 : vector<16x32xf32>
    %c0_12 = arith.constant 0 : index
    %c0_13 = arith.constant 0 : index
    %c0_14 = arith.constant 0 : index
    %30 = vector.load %arg5[%c0_12, %c0_13, %c0_14] : memref<1x32x96xf32, #tpu.memory_space<vmem>>, vector<1x32x96xf32>
    %31 = vector.shape_cast %30 : vector<1x32x96xf32> to vector<32x96xf32>
    %cst_15 = arith.constant dense<0.000000e+00> : vector<16x96xf32>
    %32 = tpu.matmul %29, %31, %cst_15 {dimension_numbers = #tpu.dot_dimension_numbers<[1], [0], [0], [1], [0, 0, 1, 1], [], []>} : vector<16x32xf32>, vector<32x96xf32>, vector<16x96xf32> -> vector<16x96xf32>
    %c0_16 = arith.constant 0 : index
    %c0_17 = arith.constant 0 : index
    %c0_18 = arith.constant 0 : index
    %33 = vector.load %arg6[%c0_16, %c0_17, %c0_18] : memref<1x1x96xf32, #tpu.memory_space<vmem>>, vector<1x1x96xf32>
    %34 = vector.shape_cast %33 : vector<1x1x96xf32> to vector<1x96xf32>
    %35 = vector.broadcast %34 : vector<1x96xf32> to vector<16x96xf32>
    %36 = arith.addf %32, %35 : vector<16x96xf32>
    %37 = vector.extract_strided_slice %36 {offsets = [0, 0], sizes = [16, 32], strides = [1, 1]} : vector<16x96xf32> to vector<16x32xf32>
    %38 = vector.shape_cast %37 : vector<16x32xf32> to vector<2x8x32xf32>
    %39 = vector.extract_strided_slice %36 {offsets = [0, 32], sizes = [16, 32], strides = [1, 1]} : vector<16x96xf32> to vector<16x32xf32>
    %40 = vector.shape_cast %39 : vector<16x32xf32> to vector<2x8x32xf32>
    %41 = vector.extract_strided_slice %36 {offsets = [0, 64], sizes = [16, 32], strides = [1, 1]} : vector<16x96xf32> to vector<16x32xf32>
    %42 = vector.shape_cast %41 : vector<16x32xf32> to vector<2x8x32xf32>
    %43 = tpu.iota {dimensions = array<i32: 0>} : vector<8x8xi32>
    %44 = tpu.iota {dimensions = array<i32: 1>} : vector<8x8xi32>
    %45 = arith.cmpi sgt, %44, %43 : vector<8x8xi32>
    %cst_19 = arith.constant -1.000000e+09 : f32
    %cst_20 = arith.constant 0.000000e+00 : f32
    %46 = vector.broadcast %cst_19 : f32 to vector<8x8xf32>
    %47 = vector.broadcast %cst_20 : f32 to vector<8x8xf32>
    %48 = arith.select %45, %46, %47 : vector<8x8xi1>, vector<8x8xf32>
    %49 = vector.extract_strided_slice %38 {offsets = [0, 0, 0], sizes = [2, 8, 8], strides = [1, 1, 1]} : vector<2x8x32xf32> to vector<2x8x8xf32>
    %50 = vector.extract_strided_slice %40 {offsets = [0, 0, 0], sizes = [2, 8, 8], strides = [1, 1, 1]} : vector<2x8x32xf32> to vector<2x8x8xf32>
    %51 = vector.extract_strided_slice %42 {offsets = [0, 0, 0], sizes = [2, 8, 8], strides = [1, 1, 1]} : vector<2x8x32xf32> to vector<2x8x8xf32>
    "tpu.trace_start"() <{level = 10 : i32, message = "bqd,bkd->bqk"}> : () -> ()
    %cst_21 = arith.constant dense<0.000000e+00> : vector<2x8x8xf32>
    %52 = tpu.matmul %49, %50, %cst_21 {dimension_numbers = #tpu.dot_dimension_numbers<[2], [2], [1], [1], [0, 0, 0, 1, 1, 1], [0], [0]>} : vector<2x8x8xf32>, vector<2x8x8xf32>, vector<2x8x8xf32> -> vector<2x8x8xf32>
    "tpu.trace_stop"() : () -> ()
    %cst_22 = arith.constant 0.353553385 : f32
    %53 = vector.broadcast %cst_22 : f32 to vector<2x8x8xf32>
    %54 = arith.mulf %52, %53 : vector<2x8x8xf32>
    %55 = vector.shape_cast %48 : vector<8x8xf32> to vector<1x8x8xf32>
    %56 = vector.broadcast %55 : vector<1x8x8xf32> to vector<2x8x8xf32>
    %57 = arith.addf %54, %56 : vector<2x8x8xf32>
    %cst_23 = arith.constant dense<0xFF800000> : vector<2x8xf32>
    %58 = vector.multi_reduction <maximumf>, %57, %cst_23 [2] : vector<2x8x8xf32> to vector<2x8xf32>
    %59 = vector.shape_cast %58 : vector<2x8xf32> to vector<2x8x1xf32>
    %60 = vector.broadcast %59 : vector<2x8x1xf32> to vector<2x8x8xf32>
    %61 = arith.subf %57, %60 : vector<2x8x8xf32>
    %62 = math.exp %61 : vector<2x8x8xf32>
    %cst_24 = arith.constant dense<0.000000e+00> : vector<2x8xf32>
    %63 = vector.multi_reduction <add>, %62, %cst_24 [2] : vector<2x8x8xf32> to vector<2x8xf32>
    %64 = vector.shape_cast %63 : vector<2x8xf32> to vector<2x8x1xf32>
    %65 = tpu.reciprocal %64 {approx = true} : vector<2x8x1xf32> -> vector<2x8x1xf32>
    %66 = vector.broadcast %65 : vector<2x8x1xf32> to vector<2x8x8xf32>
    %67 = arith.mulf %62, %66 : vector<2x8x8xf32>
    "tpu.trace_start"() <{level = 10 : i32, message = "bqk,bkd->bqd"}> : () -> ()
    %cst_25 = arith.constant dense<0.000000e+00> : vector<2x8x8xf32>
    %68 = tpu.matmul %67, %51, %cst_25 {dimension_numbers = #tpu.dot_dimension_numbers<[2], [1], [1], [2], [0, 0, 0, 1, 1, 2], [0], [0]>} : vector<2x8x8xf32>, vector<2x8x8xf32>, vector<2x8x8xf32> -> vector<2x8x8xf32>
    "tpu.trace_stop"() : () -> ()
    %69 = vector.extract_strided_slice %38 {offsets = [0, 0, 8], sizes = [2, 8, 8], strides = [1, 1, 1]} : vector<2x8x32xf32> to vector<2x8x8xf32>
    %70 = vector.extract_strided_slice %40 {offsets = [0, 0, 8], sizes = [2, 8, 8], strides = [1, 1, 1]} : vector<2x8x32xf32> to vector<2x8x8xf32>
    %71 = vector.extract_strided_slice %42 {offsets = [0, 0, 8], sizes = [2, 8, 8], strides = [1, 1, 1]} : vector<2x8x32xf32> to vector<2x8x8xf32>
    "tpu.trace_start"() <{level = 10 : i32, message = "bqd,bkd->bqk"}> : () -> ()
    %cst_26 = arith.constant dense<0.000000e+00> : vector<2x8x8xf32>
    %72 = tpu.matmul %69, %70, %cst_26 {dimension_numbers = #tpu.dot_dimension_numbers<[2], [2], [1], [1], [0, 0, 0, 1, 1, 1], [0], [0]>} : vector<2x8x8xf32>, vector<2x8x8xf32>, vector<2x8x8xf32> -> vector<2x8x8xf32>
    "tpu.trace_stop"() : () -> ()
    %cst_27 = arith.constant 0.353553385 : f32
    %73 = vector.broadcast %cst_27 : f32 to vector<2x8x8xf32>
    %74 = arith.mulf %72, %73 : vector<2x8x8xf32>
    %75 = vector.shape_cast %48 : vector<8x8xf32> to vector<1x8x8xf32>
    %76 = vector.broadcast %75 : vector<1x8x8xf32> to vector<2x8x8xf32>
    %77 = arith.addf %74, %76 : vector<2x8x8xf32>
    %cst_28 = arith.constant dense<0xFF800000> : vector<2x8xf32>
    %78 = vector.multi_reduction <maximumf>, %77, %cst_28 [2] : vector<2x8x8xf32> to vector<2x8xf32>
    %79 = vector.shape_cast %78 : vector<2x8xf32> to vector<2x8x1xf32>
    %80 = vector.broadcast %79 : vector<2x8x1xf32> to vector<2x8x8xf32>
    %81 = arith.subf %77, %80 : vector<2x8x8xf32>
    %82 = math.exp %81 : vector<2x8x8xf32>
    %cst_29 = arith.constant dense<0.000000e+00> : vector<2x8xf32>
    %83 = vector.multi_reduction <add>, %82, %cst_29 [2] : vector<2x8x8xf32> to vector<2x8xf32>
    %84 = vector.shape_cast %83 : vector<2x8xf32> to vector<2x8x1xf32>
    %85 = tpu.reciprocal %84 {approx = true} : vector<2x8x1xf32> -> vector<2x8x1xf32>
    %86 = vector.broadcast %85 : vector<2x8x1xf32> to vector<2x8x8xf32>
    %87 = arith.mulf %82, %86 : vector<2x8x8xf32>
    "tpu.trace_start"() <{level = 10 : i32, message = "bqk,bkd->bqd"}> : () -> ()
    %cst_30 = arith.constant dense<0.000000e+00> : vector<2x8x8xf32>
    %88 = tpu.matmul %87, %71, %cst_30 {dimension_numbers = #tpu.dot_dimension_numbers<[2], [1], [1], [2], [0, 0, 0, 1, 1, 2], [0], [0]>} : vector<2x8x8xf32>, vector<2x8x8xf32>, vector<2x8x8xf32> -> vector<2x8x8xf32>
    "tpu.trace_stop"() : () -> ()
    %89 = vector.extract_strided_slice %38 {offsets = [0, 0, 16], sizes = [2, 8, 8], strides = [1, 1, 1]} : vector<2x8x32xf32> to vector<2x8x8xf32>
    %90 = vector.extract_strided_slice %40 {offsets = [0, 0, 16], sizes = [2, 8, 8], strides = [1, 1, 1]} : vector<2x8x32xf32> to vector<2x8x8xf32>
    %91 = vector.extract_strided_slice %42 {offsets = [0, 0, 16], sizes = [2, 8, 8], strides = [1, 1, 1]} : vector<2x8x32xf32> to vector<2x8x8xf32>
    "tpu.trace_start"() <{level = 10 : i32, message = "bqd,bkd->bqk"}> : () -> ()
    %cst_31 = arith.constant dense<0.000000e+00> : vector<2x8x8xf32>
    %92 = tpu.matmul %89, %90, %cst_31 {dimension_numbers = #tpu.dot_dimension_numbers<[2], [2], [1], [1], [0, 0, 0, 1, 1, 1], [0], [0]>} : vector<2x8x8xf32>, vector<2x8x8xf32>, vector<2x8x8xf32> -> vector<2x8x8xf32>
    "tpu.trace_stop"() : () -> ()
    %cst_32 = arith.constant 0.353553385 : f32
    %93 = vector.broadcast %cst_32 : f32 to vector<2x8x8xf32>
    %94 = arith.mulf %92, %93 : vector<2x8x8xf32>
    %95 = vector.shape_cast %48 : vector<8x8xf32> to vector<1x8x8xf32>
    %96 = vector.broadcast %95 : vector<1x8x8xf32> to vector<2x8x8xf32>
    %97 = arith.addf %94, %96 : vector<2x8x8xf32>
    %cst_33 = arith.constant dense<0xFF800000> : vector<2x8xf32>
    %98 = vector.multi_reduction <maximumf>, %97, %cst_33 [2] : vector<2x8x8xf32> to vector<2x8xf32>
    %99 = vector.shape_cast %98 : vector<2x8xf32> to vector<2x8x1xf32>
    %100 = vector.broadcast %99 : vector<2x8x1xf32> to vector<2x8x8xf32>
    %101 = arith.subf %97, %100 : vector<2x8x8xf32>
    %102 = math.exp %101 : vector<2x8x8xf32>
    %cst_34 = arith.constant dense<0.000000e+00> : vector<2x8xf32>
    %103 = vector.multi_reduction <add>, %102, %cst_34 [2] : vector<2x8x8xf32> to vector<2x8xf32>
    %104 = vector.shape_cast %103 : vector<2x8xf32> to vector<2x8x1xf32>
    %105 = tpu.reciprocal %104 {approx = true} : vector<2x8x1xf32> -> vector<2x8x1xf32>
    %106 = vector.broadcast %105 : vector<2x8x1xf32> to vector<2x8x8xf32>
    %107 = arith.mulf %102, %106 : vector<2x8x8xf32>
    "tpu.trace_start"() <{level = 10 : i32, message = "bqk,bkd->bqd"}> : () -> ()
    %cst_35 = arith.constant dense<0.000000e+00> : vector<2x8x8xf32>
    %108 = tpu.matmul %107, %91, %cst_35 {dimension_numbers = #tpu.dot_dimension_numbers<[2], [1], [1], [2], [0, 0, 0, 1, 1, 2], [0], [0]>} : vector<2x8x8xf32>, vector<2x8x8xf32>, vector<2x8x8xf32> -> vector<2x8x8xf32>
    "tpu.trace_stop"() : () -> ()
    %109 = vector.extract_strided_slice %38 {offsets = [0, 0, 24], sizes = [2, 8, 8], strides = [1, 1, 1]} : vector<2x8x32xf32> to vector<2x8x8xf32>
    %110 = vector.extract_strided_slice %40 {offsets = [0, 0, 24], sizes = [2, 8, 8], strides = [1, 1, 1]} : vector<2x8x32xf32> to vector<2x8x8xf32>
    %111 = vector.extract_strided_slice %42 {offsets = [0, 0, 24], sizes = [2, 8, 8], strides = [1, 1, 1]} : vector<2x8x32xf32> to vector<2x8x8xf32>
    "tpu.trace_start"() <{level = 10 : i32, message = "bqd,bkd->bqk"}> : () -> ()
    %cst_36 = arith.constant dense<0.000000e+00> : vector<2x8x8xf32>
    %112 = tpu.matmul %109, %110, %cst_36 {dimension_numbers = #tpu.dot_dimension_numbers<[2], [2], [1], [1], [0, 0, 0, 1, 1, 1], [0], [0]>} : vector<2x8x8xf32>, vector<2x8x8xf32>, vector<2x8x8xf32> -> vector<2x8x8xf32>
    "tpu.trace_stop"() : () -> ()
    %cst_37 = arith.constant 0.353553385 : f32
    %113 = vector.broadcast %cst_37 : f32 to vector<2x8x8xf32>
    %114 = arith.mulf %112, %113 : vector<2x8x8xf32>
    %115 = vector.shape_cast %48 : vector<8x8xf32> to vector<1x8x8xf32>
    %116 = vector.broadcast %115 : vector<1x8x8xf32> to vector<2x8x8xf32>
    %117 = arith.addf %114, %116 : vector<2x8x8xf32>
    %cst_38 = arith.constant dense<0xFF800000> : vector<2x8xf32>
    %118 = vector.multi_reduction <maximumf>, %117, %cst_38 [2] : vector<2x8x8xf32> to vector<2x8xf32>
    %119 = vector.shape_cast %118 : vector<2x8xf32> to vector<2x8x1xf32>
    %120 = vector.broadcast %119 : vector<2x8x1xf32> to vector<2x8x8xf32>
    %121 = arith.subf %117, %120 : vector<2x8x8xf32>
    %122 = math.exp %121 : vector<2x8x8xf32>
    %cst_39 = arith.constant dense<0.000000e+00> : vector<2x8xf32>
    %123 = vector.multi_reduction <add>, %122, %cst_39 [2] : vector<2x8x8xf32> to vector<2x8xf32>
    %124 = vector.shape_cast %123 : vector<2x8xf32> to vector<2x8x1xf32>
    %125 = tpu.reciprocal %124 {approx = true} : vector<2x8x1xf32> -> vector<2x8x1xf32>
    %126 = vector.broadcast %125 : vector<2x8x1xf32> to vector<2x8x8xf32>
    %127 = arith.mulf %122, %126 : vector<2x8x8xf32>
    "tpu.trace_start"() <{level = 10 : i32, message = "bqk,bkd->bqd"}> : () -> ()
    %cst_40 = arith.constant dense<0.000000e+00> : vector<2x8x8xf32>
    %128 = tpu.matmul %127, %111, %cst_40 {dimension_numbers = #tpu.dot_dimension_numbers<[2], [1], [1], [2], [0, 0, 0, 1, 1, 2], [0], [0]>} : vector<2x8x8xf32>, vector<2x8x8xf32>, vector<2x8x8xf32> -> vector<2x8x8xf32>
    "tpu.trace_stop"() : () -> ()
    %129 = tpu.concatenate %68, %88, %108, %128 in 2 : vector<2x8x8xf32>, vector<2x8x8xf32>, vector<2x8x8xf32>, vector<2x8x8xf32> -> vector<2x8x32xf32>
    %130 = vector.shape_cast %129 : vector<2x8x32xf32> to vector<16x32xf32>
    %c0_41 = arith.constant 0 : index
    %c0_42 = arith.constant 0 : index
    %c0_43 = arith.constant 0 : index
    %131 = vector.load %arg7[%c0_41, %c0_42, %c0_43] : memref<1x32x32xf32, #tpu.memory_space<vmem>>, vector<1x32x32xf32>
    %132 = vector.shape_cast %131 : vector<1x32x32xf32> to vector<32x32xf32>
    %cst_44 = arith.constant dense<0.000000e+00> : vector<16x32xf32>
    %133 = tpu.matmul %130, %132, %cst_44 {dimension_numbers = #tpu.dot_dimension_numbers<[1], [0], [0], [1], [0, 0, 1, 1], [], []>} : vector<16x32xf32>, vector<32x32xf32>, vector<16x32xf32> -> vector<16x32xf32>
    %c0_45 = arith.constant 0 : index
    %c0_46 = arith.constant 0 : index
    %c0_47 = arith.constant 0 : index
    %134 = vector.load %arg8[%c0_45, %c0_46, %c0_47] : memref<1x1x32xf32, #tpu.memory_space<vmem>>, vector<1x1x32xf32>
    %135 = vector.shape_cast %134 : vector<1x1x32xf32> to vector<1x32xf32>
    %136 = vector.broadcast %135 : vector<1x32xf32> to vector<16x32xf32>
    %137 = arith.addf %133, %136 : vector<16x32xf32>
    %138 = vector.broadcast %5 : f32 to vector<16x32xf32>
    %139 = arith.mulf %137, %138 : vector<16x32xf32>
    %140 = arith.addf %7, %139 : vector<16x32xf32>
    %cst_48 = arith.constant dense<0.000000e+00> : vector<16xf32>
    %141 = vector.multi_reduction <add>, %140, %cst_48 [1] : vector<16x32xf32> to vector<16xf32>
    %142 = vector.shape_cast %141 : vector<16xf32> to vector<16x1xf32>
    %cst_49 = arith.constant 3.200000e+01 : f32
    %143 = vector.broadcast %cst_49 : f32 to vector<16x1xf32>
    %144 = arith.divf %142, %143 : vector<16x1xf32>
    %145 = vector.broadcast %144 : vector<16x1xf32> to vector<16x32xf32>
    %146 = arith.subf %140, %145 : vector<16x32xf32>
    %147 = arith.mulf %146, %146 : vector<16x32xf32>
    %cst_50 = arith.constant dense<0.000000e+00> : vector<16xf32>
    %148 = vector.multi_reduction <add>, %147, %cst_50 [1] : vector<16x32xf32> to vector<16xf32>
    %149 = vector.shape_cast %148 : vector<16xf32> to vector<16x1xf32>
    %cst_51 = arith.constant 3.200000e+01 : f32
    %150 = vector.broadcast %cst_51 : f32 to vector<16x1xf32>
    %151 = arith.divf %149, %150 : vector<16x1xf32>
    %152 = vector.broadcast %144 : vector<16x1xf32> to vector<16x32xf32>
    %153 = arith.subf %140, %152 : vector<16x32xf32>
    %cst_52 = arith.constant 9.99999974E-6 : f32
    %154 = vector.broadcast %cst_52 : f32 to vector<16x1xf32>
    %155 = arith.addf %151, %154 : vector<16x1xf32>
    %156 = math.rsqrt %155 : vector<16x1xf32>
    %157 = vector.broadcast %156 : vector<16x1xf32> to vector<16x32xf32>
    %158 = arith.mulf %153, %157 : vector<16x32xf32>
    %159 = vector.broadcast %3 : vector<1x32xf32> to vector<16x32xf32>
    %160 = arith.mulf %158, %159 : vector<16x32xf32>
    %161 = vector.broadcast %4 : vector<1x32xf32> to vector<16x32xf32>
    %162 = arith.addf %160, %161 : vector<16x32xf32>
    %c0_53 = arith.constant 0 : index
    %c0_54 = arith.constant 0 : index
    %c0_55 = arith.constant 0 : index
    %163 = vector.load %arg9[%c0_53, %c0_54, %c0_55] : memref<1x32x64xf32, #tpu.memory_space<vmem>>, vector<1x32x64xf32>
    %164 = vector.shape_cast %163 : vector<1x32x64xf32> to vector<32x64xf32>
    %cst_56 = arith.constant dense<0.000000e+00> : vector<16x64xf32>
    %165 = tpu.matmul %162, %164, %cst_56 {dimension_numbers = #tpu.dot_dimension_numbers<[1], [0], [0], [1], [0, 0, 1, 1], [], []>} : vector<16x32xf32>, vector<32x64xf32>, vector<16x64xf32> -> vector<16x64xf32>
    %c0_57 = arith.constant 0 : index
    %c0_58 = arith.constant 0 : index
    %c0_59 = arith.constant 0 : index
    %166 = vector.load %arg10[%c0_57, %c0_58, %c0_59] : memref<1x1x64xf32, #tpu.memory_space<vmem>>, vector<1x1x64xf32>
    %167 = vector.shape_cast %166 : vector<1x1x64xf32> to vector<1x64xf32>
    %168 = vector.broadcast %167 : vector<1x64xf32> to vector<16x64xf32>
    %169 = arith.addf %165, %168 : vector<16x64xf32>
    %cst_60 = arith.constant 5.000000e-01 : f32
    %170 = vector.broadcast %cst_60 : f32 to vector<16x64xf32>
    %171 = arith.mulf %170, %169 : vector<16x64xf32>
    %cst_61 = arith.constant 0.707106769 : f32
    %172 = vector.broadcast %cst_61 : f32 to vector<16x64xf32>
    %173 = arith.mulf %169, %172 : vector<16x64xf32>
    %174 = math.absf %173 : vector<16x64xf32>
    %cst_62 = arith.constant 0.327591091 : f32
    %175 = vector.broadcast %cst_62 : f32 to vector<16x64xf32>
    %176 = arith.mulf %175, %174 : vector<16x64xf32>
    %cst_63 = arith.constant 1.000000e+00 : f32
    %177 = vector.broadcast %cst_63 : f32 to vector<16x64xf32>
    %178 = arith.addf %177, %176 : vector<16x64xf32>
    %cst_64 = arith.constant 1.000000e+00 : f32
    %179 = vector.broadcast %cst_64 : f32 to vector<16x64xf32>
    %180 = arith.divf %179, %178 : vector<16x64xf32>
    %cst_65 = arith.constant 1.06140542 : f32
    %181 = vector.broadcast %cst_65 : f32 to vector<16x64xf32>
    %182 = arith.mulf %181, %180 : vector<16x64xf32>
    %cst_66 = arith.constant -1.45315206 : f32
    %183 = vector.broadcast %cst_66 : f32 to vector<16x64xf32>
    %184 = arith.addf %182, %183 : vector<16x64xf32>
    %185 = arith.mulf %184, %180 : vector<16x64xf32>
    %cst_67 = arith.constant 1.42141378 : f32
    %186 = vector.broadcast %cst_67 : f32 to vector<16x64xf32>
    %187 = arith.addf %185, %186 : vector<16x64xf32>
    %188 = arith.mulf %187, %180 : vector<16x64xf32>
    %cst_68 = arith.constant -0.284496725 : f32
    %189 = vector.broadcast %cst_68 : f32 to vector<16x64xf32>
    %190 = arith.addf %188, %189 : vector<16x64xf32>
    %191 = arith.mulf %190, %180 : vector<16x64xf32>
    %cst_69 = arith.constant 0.254829586 : f32
    %192 = vector.broadcast %cst_69 : f32 to vector<16x64xf32>
    %193 = arith.addf %191, %192 : vector<16x64xf32>
    %194 = arith.mulf %193, %180 : vector<16x64xf32>
    %cst_70 = arith.constant 0.000000e+00 : f32
    %195 = vector.broadcast %cst_70 : f32 to vector<16x64xf32>
    %196 = arith.subf %195, %174 : vector<16x64xf32>
    %197 = arith.mulf %196, %174 : vector<16x64xf32>
    %198 = math.exp %197 : vector<16x64xf32>
    %199 = arith.mulf %194, %198 : vector<16x64xf32>
    %cst_71 = arith.constant 1.000000e+00 : f32
    %200 = vector.broadcast %cst_71 : f32 to vector<16x64xf32>
    %201 = arith.subf %200, %199 : vector<16x64xf32>
    %cst_72 = arith.constant 0.000000e+00 : f32
    %202 = vector.broadcast %cst_72 : f32 to vector<16x64xf32>
    %203 = arith.cmpf oge, %173, %202 : vector<16x64xf32>
    %cst_73 = arith.constant 0.000000e+00 : f32
    %204 = vector.broadcast %cst_73 : f32 to vector<16x64xf32>
    %205 = arith.subf %204, %201 : vector<16x64xf32>
    %206 = arith.select %203, %201, %205 : vector<16x64xi1>, vector<16x64xf32>
    %cst_74 = arith.constant 1.000000e+00 : f32
    %207 = vector.broadcast %cst_74 : f32 to vector<16x64xf32>
    %208 = arith.addf %207, %206 : vector<16x64xf32>
    %209 = arith.mulf %171, %208 : vector<16x64xf32>
    %c0_75 = arith.constant 0 : index
    %c0_76 = arith.constant 0 : index
    %c0_77 = arith.constant 0 : index
    %210 = vector.load %arg11[%c0_75, %c0_76, %c0_77] : memref<1x64x32xf32, #tpu.memory_space<vmem>>, vector<1x64x32xf32>
    %211 = vector.shape_cast %210 : vector<1x64x32xf32> to vector<64x32xf32>
    %cst_78 = arith.constant dense<0.000000e+00> : vector<16x32xf32>
    %212 = tpu.matmul %209, %211, %cst_78 {dimension_numbers = #tpu.dot_dimension_numbers<[1], [0], [0], [1], [0, 0, 1, 1], [], []>} : vector<16x64xf32>, vector<64x32xf32>, vector<16x32xf32> -> vector<16x32xf32>
    %c0_79 = arith.constant 0 : index
    %c0_80 = arith.constant 0 : index
    %c0_81 = arith.constant 0 : index
    %213 = vector.load %arg12[%c0_79, %c0_80, %c0_81] : memref<1x1x32xf32, #tpu.memory_space<vmem>>, vector<1x1x32xf32>
    %214 = vector.shape_cast %213 : vector<1x1x32xf32> to vector<1x32xf32>
    %215 = vector.broadcast %214 : vector<1x32xf32> to vector<16x32xf32>
    %216 = arith.addf %212, %215 : vector<16x32xf32>
    %217 = vector.broadcast %5 : f32 to vector<16x32xf32>
    %218 = arith.mulf %216, %217 : vector<16x32xf32>
    %219 = arith.addf %140, %218 : vector<16x32xf32>
    %220 = vector.shape_cast %219 : vector<16x32xf32> to vector<2x8x32xf32>
    %c0_82 = arith.constant 0 : index
    %c0_83 = arith.constant 0 : index
    %c0_84 = arith.constant 0 : index
    %221 = vector.load %arg15[%c0_82, %c0_83, %c0_84] : memref<2x8x32xf32, #tpu.memory_space<vmem>>, vector<2x8x32xf32>
    tpu.vector_store %arg15[%c0_82, %c0_83, %c0_84], %220 {strides = array<i32>} : memref<2x8x32xf32, #tpu.memory_space<vmem>>, vector<2x8x32xf32>,
    %c1_i32 = arith.constant 1 : i32
    %222 = arith.cmpi eq, %arg1, %c1_i32 : i32
    %223 = arith.extui %222 : i1 to i32
    %c0_i32_85 = arith.constant 0 : i32
    %224 = arith.cmpi ne, %223, %c0_i32_85 : i32
    scf.if %224 {
      %cst_86 = arith.constant dense<0.000000e+00> : vector<16xf32>
      %225 = vector.multi_reduction <add>, %219, %cst_86 [1] : vector<16x32xf32> to vector<16xf32>
      %226 = vector.shape_cast %225 : vector<16xf32> to vector<16x1xf32>
      %cst_87 = arith.constant 3.200000e+01 : f32
      %227 = vector.broadcast %cst_87 : f32 to vector<16x1xf32>
      %228 = arith.divf %226, %227 : vector<16x1xf32>
      %229 = vector.broadcast %228 : vector<16x1xf32> to vector<16x32xf32>
      %230 = arith.subf %219, %229 : vector<16x32xf32>
      %231 = arith.mulf %230, %230 : vector<16x32xf32>
      %cst_88 = arith.constant dense<0.000000e+00> : vector<16xf32>
      %232 = vector.multi_reduction <add>, %231, %cst_88 [1] : vector<16x32xf32> to vector<16xf32>
      %233 = vector.shape_cast %232 : vector<16xf32> to vector<16x1xf32>
      %cst_89 = arith.constant 3.200000e+01 : f32
      %234 = vector.broadcast %cst_89 : f32 to vector<16x1xf32>
      %235 = arith.divf %233, %234 : vector<16x1xf32>
      %236 = vector.broadcast %228 : vector<16x1xf32> to vector<16x32xf32>
      %237 = arith.subf %219, %236 : vector<16x32xf32>
      %cst_90 = arith.constant 9.99999974E-6 : f32
      %238 = vector.broadcast %cst_90 : f32 to vector<16x1xf32>
      %239 = arith.addf %235, %238 : vector<16x1xf32>
      %240 = math.rsqrt %239 : vector<16x1xf32>
      %241 = vector.broadcast %240 : vector<16x1xf32> to vector<16x32xf32>
      %242 = arith.mulf %237, %241 : vector<16x32xf32>
      %243 = vector.broadcast %3 : vector<1x32xf32> to vector<16x32xf32>
      %244 = arith.mulf %242, %243 : vector<16x32xf32>
      %245 = vector.broadcast %4 : vector<1x32xf32> to vector<16x32xf32>
      %246 = arith.addf %244, %245 : vector<16x32xf32>
      %247 = vector.shape_cast %246 : vector<16x32xf32> to vector<2x8x32xf32>
      %c0_91 = arith.constant 0 : index
      %c0_92 = arith.constant 0 : index
      %c0_93 = arith.constant 0 : index
      %248 = vector.load %arg14[%c0_91, %c0_92, %c0_93] : memref<2x8x32xf32, #tpu.memory_space<vmem>>, vector<2x8x32xf32>
      tpu.vector_store %arg14[%c0_91, %c0_92, %c0_93], %247 {strides = array<i32>} : memref<2x8x32xf32, #tpu.memory_space<vmem>>, vector<2x8x32xf32>,
    } else {
    }
    return
  }
  func.func @transform_0(%arg0: i32, %arg1: i32) -> (i32, i32, i32) {
    %c0_i32 = arith.constant 0 : i32
    %c0_i32_0 = arith.constant 0 : i32
    %c0_i32_1 = arith.constant 0 : i32
    return %arg0, %c0_i32, %c0_i32_0 : i32, i32, i32
  }
  func.func @transform_1(%arg0: i32, %arg1: i32) -> (i32, i32) {
    %c0_i32 = arith.constant 0 : i32
    %c0_i32_0 = arith.constant 0 : i32
    %c0_i32_1 = arith.constant 0 : i32
    return %c0_i32, %c0_i32_0 : i32, i32
  }
  func.func @transform_2(%arg0: i32, %arg1: i32) -> (i32, i32) {
    %c0_i32 = arith.constant 0 : i32
    %c0_i32_0 = arith.constant 0 : i32
    %c0_i32_1 = arith.constant 0 : i32
    return %c0_i32, %c0_i32_0 : i32, i32
  }
  func.func @transform_3(%arg0: i32, %arg1: i32) -> (i32, i32, i32) {
    %c0_i32 = arith.constant 0 : i32
    %c0_i32_0 = arith.constant 0 : i32
    %c0_i32_1 = arith.constant 0 : i32
    return %arg1, %c0_i32, %c0_i32_0 : i32, i32, i32
  }
  func.func @transform_4(%arg0: i32, %arg1: i32) -> (i32, i32, i32) {
    %c0_i32 = arith.constant 0 : i32
    %c0_i32_0 = arith.constant 0 : i32
    %c0_i32_1 = arith.constant 0 : i32
    return %arg1, %c0_i32, %c0_i32_0 : i32, i32, i32
  }
  func.func @transform_5(%arg0: i32, %arg1: i32) -> (i32, i32, i32) {
    %c0_i32 = arith.constant 0 : i32
    %c0_i32_0 = arith.constant 0 : i32
    %c0_i32_1 = arith.constant 0 : i32
    return %arg1, %c0_i32, %c0_i32_0 : i32, i32, i32
  }
  func.func @transform_6(%arg0: i32, %arg1: i32) -> (i32, i32, i32) {
    %c0_i32 = arith.constant 0 : i32
    %c0_i32_0 = arith.constant 0 : i32
    %c0_i32_1 = arith.constant 0 : i32
    return %arg1, %c0_i32, %c0_i32_0 : i32, i32, i32
  }
  func.func @transform_7(%arg0: i32, %arg1: i32) -> (i32, i32, i32) {
    %c0_i32 = arith.constant 0 : i32
    %c0_i32_0 = arith.constant 0 : i32
    %c0_i32_1 = arith.constant 0 : i32
    return %arg1, %c0_i32, %c0_i32_0 : i32, i32, i32
  }
  func.func @transform_8(%arg0: i32, %arg1: i32) -> (i32, i32, i32) {
    %c0_i32 = arith.constant 0 : i32
    %c0_i32_0 = arith.constant 0 : i32
    %c0_i32_1 = arith.constant 0 : i32
    return %arg1, %c0_i32, %c0_i32_0 : i32, i32, i32
  }
  func.func @transform_9(%arg0: i32, %arg1: i32) -> (i32, i32, i32) {
    %c0_i32 = arith.constant 0 : i32
    %c0_i32_0 = arith.constant 0 : i32
    %c0_i32_1 = arith.constant 0 : i32
    return %arg1, %c0_i32, %c0_i32_0 : i32, i32, i32
  }
  func.func @transform_10(%arg0: i32, %arg1: i32) -> (i32, i32, i32) {
    %c0_i32 = arith.constant 0 : i32
    %c0_i32_0 = arith.constant 0 : i32
    %c0_i32_1 = arith.constant 0 : i32
    return %arg1, %c0_i32, %c0_i32_0 : i32, i32, i32
  }
  func.func @transform_11(%arg0: i32, %arg1: i32) -> i32 {
    %c0_i32 = arith.constant 0 : i32
    %c0_i32_0 = arith.constant 0 : i32
    return %c0_i32 : i32
  }
  func.func @transform_12(%arg0: i32, %arg1: i32) -> (i32, i32, i32) {
    %c0_i32 = arith.constant 0 : i32
    %c0_i32_0 = arith.constant 0 : i32
    %c0_i32_1 = arith.constant 0 : i32
    return %arg0, %c0_i32, %c0_i32_0 : i32, i32, i32
  }
}

</mosaic_0001>

<bundles_post_ra>
// kernel: tpu_custom_call.1
= control target key start
LH: loop header
LB: loop body
LE: loop exit
PB: predicated region body
PF: predicated region fallthrough
CT: control target
= control target key end

     0   :  { %s4679_s0 = inlined_call_operand.hbm [shape: f32[2,8,32], index: 0, kind: input, shape index: {}]   ;;  %s4680_s1 = inlined_call_operand.hbm [shape: f32[1,32], index: 1, kind: input, shape index: {}]   ;;  %s4681_s2 = inlined_call_operand.hbm [shape: f32[1,32], index: 2, kind: input, shape index: {}]   ;;  %s4682_s3 = inlined_call_operand.hbm [shape: f32[2,32,96], index: 3, kind: input, shape index: {}]   ;;  %s4683_s4 = inlined_call_operand.hbm [shape: f32[2,1,96], index: 4, kind: input, shape index: {}]   ;;  %s4684_s5 = inlined_call_operand.hbm [shape: f32[2,32,32], index: 5, kind: input, shape index: {}]   ;;  %s4685_s6 = inlined_call_operand.hbm [shape: f32[2,1,32], index: 6, kind: input, shape index: {}]   ;;  %s4686_s7 = inlined_call_operand.hbm [shape: f32[2,32,64], index: 7, kind: input, shape index: {}]   ;;  %s4687_s8 = inlined_call_operand.hbm [shape: f32[2,1,64], index: 8, kind: input, shape index: {}]   ;;  %s4688_s9 = inlined_call_operand.hbm [shape: f32[2,64,32], index: 9, kind: input, shape index: {}]   ;;  %s4689_s10 = inlined_call_operand.hbm [shape: f32[2,1,32], index: 10, kind: input, shape index: {}]   ;;  %s4690_s11 = inlined_call_operand.<no memory space> [shape: f32[1], index: 11, kind: input, shape index: {}]   ;;  %s4691_s12 = inlined_call_operand.hbm [shape: f32[2,8,32], index: 12, kind: output, shape index: {}]  }
   0x1   :  { %4714 = sst [smem:[#allocation38_spill]] %s4680_s1 }
   0x2   :  { %4715 = sst [smem:[#allocation39_spill]] %s4682_s3 }
   0x3   :  { %4716 = sst [smem:[#allocation40_spill]] %s4684_s5 }
   0x4   :  { %4717 = sst [smem:[#allocation41_spill]] %s4691_s12 }
   0x5   :  { %17 = sst [smem:[#allocation3]] %s4690_s11 }
   0x6   :  { %18 = vsyncpa [#allocation5], 0 }
   0x7   :  { %19 = vsyncpa [#allocation8], 0 }
   0x8   :  { %20 = vsyncpa [#allocation11], 0 }
   0x9   :  { %22 = vsyncpa [#allocation11 + $0x1], 0 }
   0xa   :  { %23 = vsyncpa [#allocation14], 0 }
   0xb   :  { %25 = vsyncpa [#allocation14 + $0x1], 0 }
   0xc   :  { %26 = vsyncpa [#allocation17], 0 }
   0xd   :  { %28 = vsyncpa [#allocation17 + $0x1], 0 }
   0xe   :  { %29 = vsyncpa [#allocation20], 0 }
   0xf   :  { %31 = vsyncpa [#allocation20 + $0x1], 0 }
  0x10   :  { %32 = vsyncpa [#allocation6], 0  ;;  %s3944_s23 = smov 0   ;;  %s3946_s24 = smov 0  }
  0x11   :  { %s3948_s25 = smov 0   ;;  %s3950_s26 = smov 0  }
  0x12   :  { %s3952_s11 = smov 0   ;;  %s3954_s27 = smov 0  }
  0x13 LB: > { %4718 = sst [smem:[#allocation30_spill]] %s3827_s24  ;;  %s3973_s28 = sadd.s32 4294967295, %s3843_s27   ;;  %s3843_s27 = sphi %s3954_s27, %s38_s27   ;;  %s3839_s11 = sphi %s3952_s11, %s4767_s11   ;;  %s3835_s26 = sphi %s3950_s26, %s4766_s26   ;;  %s3831_s25 = sphi %s3948_s25, %s4765_s25   ;;  %s3827_s24 = sphi %s3946_s24, %s4764_s24   ;;  %s3823_s23 = sphi %s3944_s23, %s4761_s23  }
  0x14   : > { %4719 = sst [smem:[#allocation31_spill]] %s3835_s26  ;;  %p132_p0 = scmp.ne.s32.totalorder %s3831_s25, %s3827_s24 }
  0x15   : > { %4720 = sst [smem:[#allocation32_spill]] %s3843_s27  ;;  %p133_p1 = scmp.eq.s32.totalorder %s3843_s27, 0 }
  0x16   : > { %4721 = sst [smem:[#allocation33_spill]] %s3973_s28  ;;  %p138_p2 = scmp.ne.s32.totalorder %s3827_s24, %s3823_s23 }
  0x17   : > { %p4692_p3 = scmp.eq.s32.totalorder %s3973_s28, 0  ;;  %p134_p4 = por %p133_p1, %p132_p0 }
  0x18   : > { %p2911_p5 = scmp.ge.s32.totalorder %s3843_s27, 1  ;;  %p378_p7 = scmp.lt.s32.totalorder %s3843_s27, 3 }
  0x19   : > { %p3984_p6 = por %p4692_p3, %p138_p2  ;;  %s3845_s14 = smov [#allocation7]  }
  0x1a   : > { %p3989_p8 = pnand %p2911_p5, %p378_p7  ;;  %s407_s15 = sshll.u32 %s3845_s14, 4  ;;  %s408_s15 = int_to_ptr.vmem [resolvable:$true] %s407_s15 }
  0x1b   : > { %s4722_s30 = scalar_select %p3984_p6, 1, 0 }
  0x1c   : > { %s4724_s13 = scalar_select %p3989_p8, 1, 0 }
  0x1d   : > { %4723 = sst [smem:[#allocation34_spill]] %s4722_s30  ;;  %p3252_p9 = pneg %p3989_p8 }
  0x1e   : > { %4725 = sst [smem:[#allocation35_spill]] %s4724_s13  ;;  %p3290_p10 = scmp.lt.s32.totalorder %s3843_s27, 2 }
  0x1f   : > { %p3998_p11 = pnand %p3252_p9, %p4692_p3  ;;  %s4728_s1 = sld [smem:[#allocation38_spill]] }
  0x20   : > { %p4002_p12 = pnand %p3290_p10, %p134_p4 }
  0x21   : > { %s4726_s16 = scalar_select %p3998_p11, 1, 0 }
  0x22   : > { %s4727_s17 = scalar_select %p4002_p12, 1, 0 }
  0x23   : > { %p4014_p0 = pneg %p3998_p11 }
  0x25   : > { %s3419_s20 = scalar_lea.hbm %s4728_s1, 16 }
  0x26   : > { %p3420_p13 = scmp.ne.s32.totalorder %s4728_s1, %s3419_s20  ;;  %p3426_p4 = scmp.lt.u32.totalorder %s3419_s20, %s4728_s1 }
  0x27   : > { %s4729_s23 = scalar_select %p4014_p0, 1, 0 }
  0x28   : > { %p3422_p1 = pnand %p4014_p0, %p3420_p13 }
  0x2a   : > { %p3423_p2 = pneg %p3422_p1 }
  0x2c   : > { %p3428_p5 = pnand %p3426_p4, %p3423_p2 }
  0x2e   : > { %3431 = shalt.err (!%p3428_p5)
}
  0x2f   : > { %s3432_s18 = scalar_lea.vmem %s408_s15, 16  ;;  %s3439_s19 = scalar_lea.vmem %s408_s15, 32 }
  0x30   : > { %p3433_p7 = scmp.ne.s32.totalorder %s408_s15, %s3432_s18  ;;  %p3440_p3 = scmp.lt.s32.totalorder %s408_s15, %s408_s15 }
  0x31   : > { %p3441_p6 = scmp.lt.s32.totalorder %s3439_s19, %s3432_s18 }
  0x32   : > { %p3435_p9 = pnand %p3433_p7, %p4014_p0 }
  0x33   : > { %p3442_p8 = por %p3441_p6, %p3440_p3 }
  0x34   : > { %p3436_p10 = pneg %p3435_p9 }
  0x36   : > { %p3443_p12 = pnand %p3442_p8, %p3436_p10 }
  0x38   : > { %3446 = shalt.err (!%p3443_p12)
}
  0x39   : > { %3258 = dma.hbm_to_vmem [thread:$0]  (!%p3998_p11), %s4728_s1, 16, %s408_s15, [#allocation8]  }
  0x3a   : > { %s47_s29 = sadd.s32 1, %s3839_s11  ;;  %s4032_s20 = sand.u32 1, %s3843_s27  }
  0x3b   : > { %p48_p3 = scmp.ge.s32.totalorder %s47_s29, 2  ;;  %s4035_s14 = sand.u32 1, %s3831_s25  }
  0x3c   : > { %s4038_s18 = sshll.u32 %s3839_s11, 9  ;;  %s4043_s19 = sshll.u32 %s4035_s14, 5 }
  0x3d   : > { %s4769_s29 = smov (%p48_p3, %s47_s29), 0  ;;  %s4731_s3 = sld [smem:[#allocation39_spill]] }
  0x3e   : > { %4730 = sst [smem:[#allocation36_spill]] %s4769_s29  ;;  %s122_s1 = ssub.s32 %s3839_s11, %s4769_s29 }
  0x3f   : > { %p123_p6 = scmp.eq.s32.totalorder %s122_s1, 0  ;;  %s436_s27 = scalar_lea.vmem [#allocation10], %s4043_s19 }
  0x40   : > { %s443_s12 = sshll.u32 %s436_s27, 4  ;;  %s4732_s26 = sadd.s32 1, %s3831_s25  ;;  %s4054_s12 = int_to_ptr.vmem [resolvable:$true] %s443_s12 }
  0x41   : > { %s4059_s30 = scalar_select %p123_p6, %s3831_s25, %s4732_s26  }
  0x42   : > { %s4710_s24 = scalar_lea.sflag [#allocation11], %s4032_s20  ;;  %p4734_p12 = scmp.ne.s32.totalorder %s4727_s17, 0 }
  0x43   : > { %s4049_s15 = scalar_lea.hbm %s4731_s3, %s4038_s18  ;;  %4733 = sst [smem:[#allocation37_spill]] %s4059_s30 }
  0x44   : > { %s3447_s28 = scalar_lea.hbm %s4049_s15, 512  ;;  %p4066_p13 = pneg %p4734_p12 }
  0x45   : > { %p3448_p8 = scmp.ne.s32.totalorder %s4049_s15, %s3447_s28  ;;  %s3452_s27 = scalar_lea.hbm %s4731_s3, 1024 }
  0x46   : > { %p3453_p4 = scmp.lt.u32.totalorder %s4049_s15, %s4731_s3  ;;  %p3454_p5 = scmp.lt.u32.totalorder %s3452_s27, %s3447_s28 }
  0x47   : > { %p3450_p1 = pnand %p4066_p13, %p3448_p8  ;;  %p3456_p9 = scmp.lt.u32.totalorder %s3447_s28, %s4049_s15 }
  0x48   : > { %p3455_p7 = por %p3454_p5, %p3453_p4 }
  0x49   : > { %p3451_p2 = pneg %p3450_p1 }
  0x4a   : > { %p3457_p10 = por %p3456_p9, %p3455_p7 }
  0x4c   : > { %p3458_p3 = pnand %p3457_p10, %p3451_p2 }
  0x4e   : > { %3461 = shalt.err (!%p3458_p3)
}
  0x4f   : > { %s3462_s26 = scalar_lea.vmem %s4054_s12, 512  ;;  %s3846_s1 = smov [#allocation10]  }
  0x50   : > { %p3463_p6 = scmp.ne.s32.totalorder %s4054_s12, %s3462_s26  ;;  %s3467_s22 = sshll.u32 %s3846_s1, 4  ;;  %s3468_s22 = int_to_ptr.vmem [resolvable:$false] %s3467_s22 }
  0x51   : > { %s3469_s13 = scalar_lea.vmem %s3468_s22, 1024  ;;  %p3470_p11 = scmp.lt.s32.totalorder %s4054_s12, %s3468_s22 }
  0x52   : > { %p3465_p8 = pnand %p3463_p6, %p4066_p13  ;;  %p3471_p0 = scmp.lt.s32.totalorder %s3469_s13, %s3462_s26 }
  0x54   : > { %p3466_p1 = pneg %p3465_p8  ;;  %p3472_p4 = por %p3471_p0, %p3470_p11 }
  0x56   : > { %p3473_p5 = pnand %p3472_p4, %p3466_p1 }
  0x58   : > { %3476 = shalt.err (!%p3473_p5)
}
  0x59   : > { %s3847_s28 = smov 128   ;;  %s3848_s29 = smov 8  }
  0x5a   : > { %3265 = dma.hbm_to_vmem [thread:$0]  (!%p4734_p12), %s4049_s15, 512, %s4054_s12, %s4710_s24, %s3847_s28, %s3847_s28, %s3848_s29  }
  0x5b   : > { %s4736_s5 = sld [smem:[#allocation40_spill]]  ;;  %s474_s22 = scalar_lea.vmem [#allocation13], %s4043_s19 }
  0x5c   : > { %s481_s13 = sshll.u32 %s474_s22, 4  ;;  %s4711_s3 = scalar_lea.sflag [#allocation14], %s4032_s20  ;;  %s4101_s13 = int_to_ptr.vmem [resolvable:$true] %s481_s13 }
  0x61   : > { %s4098_s1 = scalar_lea.hbm %s4736_s5, %s4038_s18  ;;  %s3482_s27 = scalar_lea.hbm %s4736_s5, 1024 }
  0x62   : > { %s3477_s30 = scalar_lea.hbm %s4098_s1, 512  ;;  %p3483_p7 = scmp.lt.u32.totalorder %s4098_s1, %s4736_s5 }
  0x63   : > { %p3478_p11 = scmp.ne.s32.totalorder %s4098_s1, %s3477_s30  ;;  %p3484_p9 = scmp.lt.u32.totalorder %s3482_s27, %s3477_s30 }
  0x64   : > { %p3486_p3 = scmp.lt.u32.totalorder %s3477_s30, %s4098_s1 }
  0x65   : > { %p3480_p0 = pnand %p3478_p11, %p4066_p13  ;;  %p3485_p10 = por %p3484_p9, %p3483_p7 }
  0x67   : > { %p3481_p2 = pneg %p3480_p0  ;;  %p3487_p6 = por %p3486_p3, %p3485_p10 }
  0x69   : > { %p3488_p8 = pnand %p3487_p6, %p3481_p2 }
  0x6b   : > { %3491 = shalt.err (!%p3488_p8)
}
  0x6c   : > { %s3492_s22 = scalar_lea.vmem %s4101_s13, 512  ;;  %s3849_s12 = smov [#allocation13]  }
  0x6d   : > { %p3493_p1 = scmp.ne.s32.totalorder %s4101_s13, %s3492_s22  ;;  %s3497_s15 = sshll.u32 %s3849_s12, 4  ;;  %s3498_s15 = int_to_ptr.vmem [resolvable:$false] %s3497_s15 }
  0x6e   : > { %s3499_s24 = scalar_lea.vmem %s3498_s15, 1024  ;;  %p3500_p11 = scmp.lt.s32.totalorder %s4101_s13, %s3498_s15 }
  0x6f   : > { %p3495_p4 = pnand %p3493_p1, %p4066_p13  ;;  %p3501_p0 = scmp.lt.s32.totalorder %s3499_s24, %s3492_s22 }
  0x71   : > { %p3496_p5 = pneg %p3495_p4  ;;  %p3502_p7 = por %p3501_p0, %p3500_p11 }
  0x73   : > { %p3503_p9 = pnand %p3502_p7, %p3496_p5 }
  0x75   : > { %3506 = shalt.err (!%p3503_p9)
}
  0x76   : > { %3271 = dma.hbm_to_vmem [thread:$0]  (!%p4734_p12), %s4098_s1, 512, %s4101_s13, %s4711_s3, %s3847_s28, %s3847_s28, %s3848_s29  }
  0x77   : > { %s4134_s26 = scalar_lea.hbm %s4686_s7, %s4038_s18  ;;  %s512_s22 = scalar_lea.vmem [#allocation16], %s4043_s19 }
  0x78   : > { %s519_s12 = sshll.u32 %s512_s22, 4  ;;  %s4712_s15 = scalar_lea.sflag [#allocation17], %s4032_s20  ;;  %s4137_s12 = int_to_ptr.vmem [resolvable:$true] %s519_s12 }
  0x79   : > { %s3507_s24 = scalar_lea.hbm %s4134_s26, 512  ;;  %s3512_s30 = scalar_lea.hbm %s4686_s7, 1024 }
  0x7a   : > { %p3508_p2 = scmp.ne.s32.totalorder %s4134_s26, %s3507_s24  ;;  %p3513_p6 = scmp.lt.u32.totalorder %s4134_s26, %s4686_s7 }
  0x7b   : > { %p3514_p8 = scmp.lt.u32.totalorder %s3512_s30, %s3507_s24  ;;  %p3516_p4 = scmp.lt.u32.totalorder %s3507_s24, %s4134_s26 }
  0x7c   : > { %p3510_p10 = pnand %p3508_p2, %p4066_p13 }
  0x7d   : > { %p3515_p1 = por %p3514_p8, %p3513_p6 }
  0x7e   : > { %p3511_p3 = pneg %p3510_p10 }
  0x7f   : > { %p3517_p5 = por %p3516_p4, %p3515_p1 }
  0x81   : > { %p3518_p11 = pnand %p3517_p5, %p3511_p3 }
  0x83   : > { %3521 = shalt.err (!%p3518_p11)
}
  0x84   : > { %s3522_s19 = scalar_lea.vmem %s4137_s12, 512  ;;  %s3850_s22 = smov [#allocation16]  }
  0x85   : > { %p3523_p0 = scmp.ne.s32.totalorder %s4137_s12, %s3522_s19  ;;  %s3527_s1 = sshll.u32 %s3850_s22, 4  ;;  %s3528_s1 = int_to_ptr.vmem [resolvable:$false] %s3527_s1 }
  0x86   : > { %s3529_s13 = scalar_lea.vmem %s3528_s1, 1024  ;;  %p3530_p2 = scmp.lt.s32.totalorder %s4137_s12, %s3528_s1 }
  0x87   : > { %p3525_p7 = pnand %p3523_p0, %p4066_p13  ;;  %p3531_p10 = scmp.lt.s32.totalorder %s3529_s13, %s3522_s19 }
  0x89   : > { %p3526_p9 = pneg %p3525_p7  ;;  %p3532_p6 = por %p3531_p10, %p3530_p2 }
  0x8b   : > { %p3533_p8 = pnand %p3532_p6, %p3526_p9 }
  0x8d   : > { %3536 = shalt.err (!%p3533_p8)
}
  0x8e   : > { %3277 = dma.hbm_to_vmem [thread:$0]  (!%p4734_p12), %s4134_s26, 512, %s4137_s12, %s4712_s15, %s3847_s28, %s3847_s28, %s3848_s29  }
  0x8f   : > { %s2928_s24 = sshll.u32 %s4035_s14, 6  ;;  %s2987_s30 = sshll.u32 %s3839_s11, 10 }
  0x90   : > { %s4171_s19 = scalar_lea.hbm %s4688_s9, %s2987_s30  ;;  %s550_s22 = scalar_lea.vmem [#allocation19], %s2928_s24 }
  0x91   : > { %s557_s1 = sshll.u32 %s550_s22, 4  ;;  %s547_s13 = scalar_lea.sflag [#allocation20], %s4032_s20  ;;  %s4173_s1 = int_to_ptr.vmem [resolvable:$true] %s557_s1 }
  0x92   : > { %s3537_s3 = scalar_lea.hbm %s4171_s19, 1024  ;;  %s3542_s18 = scalar_lea.hbm %s4688_s9, 2048 }
  0x93   : > { %p3538_p3 = scmp.ne.s32.totalorder %s4171_s19, %s3537_s3  ;;  %p3543_p5 = scmp.lt.u32.totalorder %s4171_s19, %s4688_s9 }
  0x94   : > { %p3544_p11 = scmp.lt.u32.totalorder %s3542_s18, %s3537_s3  ;;  %p3546_p7 = scmp.lt.u32.totalorder %s3537_s3, %s4171_s19 }
  0x95   : > { %p3540_p1 = pnand %p3538_p3, %p4066_p13 }
  0x96   : > { %p3545_p0 = por %p3544_p11, %p3543_p5 }
  0x97   : > { %p3541_p4 = pneg %p3540_p1 }
  0x98   : > { %p3547_p9 = por %p3546_p7, %p3545_p0 }
  0x9a   : > { %p3548_p2 = pnand %p3547_p9, %p3541_p4 }
  0x9c   : > { %3551 = shalt.err (!%p3548_p2)
}
  0x9d   : > { %s3552_s24 = scalar_lea.vmem %s4173_s1, 1024  ;;  %s3851_s22 = smov [#allocation19]  }
  0x9e   : > { %p3553_p10 = scmp.ne.s32.totalorder %s4173_s1, %s3552_s24  ;;  %s3557_s26 = sshll.u32 %s3851_s22, 4  ;;  %s3558_s26 = int_to_ptr.vmem [resolvable:$false] %s3557_s26 }
  0x9f   : > { %s3559_s12 = scalar_lea.vmem %s3558_s26, 2048  ;;  %p3560_p3 = scmp.lt.s32.totalorder %s4173_s1, %s3558_s26 }
  0xa0   : > { %p3555_p6 = pnand %p3553_p10, %p4066_p13  ;;  %p3561_p1 = scmp.lt.s32.totalorder %s3559_s12, %s3552_s24 }
  0xa2   : > { %p3556_p8 = pneg %p3555_p6  ;;  %p3562_p5 = por %p3561_p1, %p3560_p3 }
  0xa4   : > { %p3563_p11 = pnand %p3562_p5, %p3556_p8 }
  0xa6   : > { %3566 = shalt.err (!%p3563_p11)
}
  0xa7   : > { %3283 = dma.hbm_to_vmem [thread:$0]  (!%p4734_p12), %s4171_s19, 1024, %s4173_s1, %s547_s13, %s3847_s28, %s3847_s28, %s3848_s29  }
  0xa8   : > { %s3852_s3 = smov [#allocation4]   ;;  %s3853_s30 = smov [#allocation9]  }
  0xa9   : > { %s393_s18 = sshll.u32 %s3852_s3, 4  ;;  %s418_s27 = sshll.u32 %s3853_s30, 4  ;;  %s394_s18 = int_to_ptr.vmem [resolvable:$true] %s393_s18  ;;  %s4202_s27 = int_to_ptr.vmem [resolvable:$true] %s418_s27 }
  0xaa   : > { %s3567_s26 = scalar_lea.hbm %s4679_s0, 256  ;;  %p4737_p0 = scmp.ne.s32.totalorder %s4729_s23, 0 }
  0xab   : > { %p3568_p4 = scmp.ne.s32.totalorder %s4679_s0, %s3567_s26  ;;  %p3574_p2 = scmp.lt.u32.totalorder %s3567_s26, %s4679_s0 }
  0xad   : > { %p3570_p7 = pnand %p3568_p4, %p4737_p0 }
  0xaf   : > { %p3571_p9 = pneg %p3570_p7 }
  0xb1   : > { %p3576_p10 = pnand %p3574_p2, %p3571_p9 }
  0xb3   : > { %3579 = shalt.err (!%p3576_p10)
}
  0xb4   : > { %s3580_s1 = scalar_lea.vmem %s394_s18, 256  ;;  %p3588_p1 = scmp.lt.s32.totalorder %s394_s18, %s394_s18 }
  0xb5   : > { %p3581_p6 = scmp.ne.s32.totalorder %s394_s18, %s3580_s1  ;;  %p3589_p5 = scmp.lt.s32.totalorder %s3580_s1, %s3580_s1 }
  0xb7   : > { %p3583_p8 = pnand %p3581_p6, %p4737_p0  ;;  %p3590_p11 = por %p3589_p5, %p3588_p1 }
  0xb9   : > { %p3584_p3 = pneg %p3583_p8 }
  0xbb   : > { %p3591_p12 = pnand %p3590_p11, %p3584_p3 }
  0xbd   : > { %3594 = shalt.err (!%p3591_p12)
}
  0xbe   : > { %p4738_p4 = scmp.ne.s32.totalorder %s4726_s16, 0  ;;  %s3595_s24 = scalar_lea.hbm %s4681_s2, 16 }
  0xbf   : > { %p3596_p7 = scmp.ne.s32.totalorder %s4681_s2, %s3595_s24  ;;  %p3602_p2 = scmp.lt.u32.totalorder %s3595_s24, %s4681_s2 }
  0xc0   : > { %3255 = dma.hbm_to_vmem [thread:$0]  (!%p4738_p4), %s4679_s0, 256, %s394_s18, [#allocation5], %s3847_s28, %s3847_s28, %s3848_s29  }
  0xc1   : > { %p3598_p12 = pnand %p3596_p7, %p4737_p0 }
  0xc3   : > { %p3599_p9 = pneg %p3598_p12 }
  0xc5   : > { %p3604_p10 = pnand %p3602_p2, %p3599_p9 }
  0xc7   : > { %3607 = shalt.err (!%p3604_p10)
}
  0xc8   : > { %s3608_s28 = scalar_lea.vmem %s4202_s27, 16  ;;  %s3615_s29 = scalar_lea.vmem %s4202_s27, 32 }
  0xc9   : > { %p3609_p6 = scmp.ne.s32.totalorder %s4202_s27, %s3608_s28  ;;  %p3616_p1 = scmp.lt.s32.totalorder %s4202_s27, %s4202_s27 }
  0xca   : > { %p3617_p5 = scmp.lt.s32.totalorder %s3615_s29, %s3608_s28 }
  0xcb   : > { %p3611_p8 = pnand %p3609_p6, %p4737_p0 }
  0xcc   : > { %p3618_p11 = por %p3617_p5, %p3616_p1 }
  0xcd   : > { %p3612_p3 = pneg %p3611_p8 }
  0xcf   : > { %p3619_p7 = pnand %p3618_p11, %p3612_p3 }
  0xd1   : > { %3622 = shalt.err (!%p3619_p7)
}
  0xd2   : > { %3261 = dma.hbm_to_vmem [thread:$0]  (!%p4738_p4), %s4681_s2, 16, %s4202_s27, [#allocation8]  }
  0xd3   : > { %s4250_s23 = sshll.u32 %s3839_s11, 4  ;;  %s456_s16 = scalar_lea.vmem [#allocation12], %s4035_s14 }
  0xd4   : > { %s4256_s3 = scalar_lea.hbm %s4683_s4, %s4250_s23  ;;  %s463_s30 = sshll.u32 %s456_s16, 4  ;;  %s464_s30 = int_to_ptr.vmem [resolvable:$true] %s463_s30 }
  0xd5   : > { %s3623_s24 = scalar_lea.hbm %s4256_s3, 16  ;;  %s3628_s26 = scalar_lea.hbm %s4683_s4, 32 }
  0xd6   : > { %p3624_p0 = scmp.ne.s32.totalorder %s4256_s3, %s3623_s24  ;;  %p3629_p9 = scmp.lt.u32.totalorder %s4256_s3, %s4683_s4 }
  0xd7   : > { %p3630_p2 = scmp.lt.u32.totalorder %s3628_s26, %s3623_s24  ;;  %p3632_p6 = scmp.lt.u32.totalorder %s3623_s24, %s4256_s3 }
  0xd8   : > { %p3626_p12 = pnand %p3624_p0, %p4066_p13 }
  0xd9   : > { %p3631_p10 = por %p3630_p2, %p3629_p9 }
  0xda   : > { %p3627_p4 = pneg %p3626_p12 }
  0xdb   : > { %p3633_p8 = por %p3632_p6, %p3631_p10 }
  0xdd   : > { %p3634_p3 = pnand %p3633_p8, %p3627_p4 }
  0xdf   : > { %3637 = shalt.err (!%p3634_p3)
}
  0xe0   : > { %s3638_s28 = scalar_lea.vmem %s464_s30, 16  ;;  %s3854_s29 = smov [#allocation12]  }
  0xe1   : > { %p3639_p1 = scmp.ne.s32.totalorder %s464_s30, %s3638_s28  ;;  %s3643_s18 = sshll.u32 %s3854_s29, 4  ;;  %s3644_s18 = int_to_ptr.vmem [resolvable:$false] %s3643_s18 }
  0xe2   : > { %s3645_s1 = scalar_lea.vmem %s3644_s18, 32  ;;  %p3646_p7 = scmp.lt.s32.totalorder %s464_s30, %s3644_s18 }
  0xe3   : > { %p3641_p5 = pnand %p3639_p1, %p4066_p13  ;;  %p3647_p0 = scmp.lt.s32.totalorder %s3645_s1, %s3638_s28 }
  0xe5   : > { %p3642_p11 = pneg %p3641_p5  ;;  %p3648_p12 = por %p3647_p0, %p3646_p7 }
  0xe7   : > { %p3649_p2 = pnand %p3648_p12, %p3642_p11 }
  0xe9   : > { %3652 = shalt.err (!%p3649_p2)
}
  0xea   : > { %p4739_p9 = scmp.ne.s32.totalorder %s4727_s17, 0  ;;  %s4740_s5 = scalar_lea.sflag [#allocation11], %s4032_s20 }
  0xeb   : > { %s4282_s24 = scalar_lea.hbm %s4685_s6, %s4250_s23  ;;  %s494_s27 = scalar_lea.vmem [#allocation15], %s4035_s14 }
  0xec   : > { %3268 = dma.hbm_to_vmem [thread:$0]  (!%p4739_p9), %s4256_s3, 16, %s464_s30, %s4740_s5  }
  0xed   : > { %s501_s22 = sshll.u32 %s494_s27, 4  ;;  %s3653_s26 = scalar_lea.hbm %s4282_s24, 16  ;;  %s502_s22 = int_to_ptr.vmem [resolvable:$true] %s501_s22 }
  0xee   : > { %p3654_p4 = scmp.ne.s32.totalorder %s4282_s24, %s3653_s26  ;;  %s3658_s3 = scalar_lea.hbm %s4685_s6, 32 }
  0xef   : > { %p3659_p8 = scmp.lt.u32.totalorder %s4282_s24, %s4685_s6  ;;  %p3660_p3 = scmp.lt.u32.totalorder %s3658_s3, %s3653_s26 }
  0xf0   : > { %p3656_p10 = pnand %p3654_p4, %p4066_p13  ;;  %p3662_p5 = scmp.lt.u32.totalorder %s3653_s26, %s4282_s24 }
  0xf1   : > { %p3661_p1 = por %p3660_p3, %p3659_p8 }
  0xf2   : > { %p3657_p6 = pneg %p3656_p10 }
  0xf3   : > { %p3663_p11 = por %p3662_p5, %p3661_p1 }
  0xf5   : > { %p3664_p7 = pnand %p3663_p11, %p3657_p6 }
  0xf7   : > { %3667 = shalt.err (!%p3664_p7)
}
  0xf8   : > { %s3668_s29 = scalar_lea.vmem %s502_s22, 16  ;;  %s3855_s18 = smov [#allocation15]  }
  0xf9   : > { %p3669_p0 = scmp.ne.s32.totalorder %s502_s22, %s3668_s29  ;;  %s3673_s1 = sshll.u32 %s3855_s18, 4  ;;  %s3674_s1 = int_to_ptr.vmem [resolvable:$false] %s3673_s1 }
  0xfa   : > { %s3675_s5 = scalar_lea.vmem %s3674_s1, 32  ;;  %p3676_p4 = scmp.lt.s32.totalorder %s502_s22, %s3674_s1 }
  0xfb   : > { %p3671_p12 = pnand %p3669_p0, %p4066_p13  ;;  %p3677_p10 = scmp.lt.s32.totalorder %s3675_s5, %s3668_s29 }
  0xfd   : > { %p3672_p2 = pneg %p3671_p12  ;;  %p3678_p9 = por %p3677_p10, %p3676_p4 }
  0xff   : > { %p3679_p3 = pnand %p3678_p9, %p3672_p2 }
 0x101   : > { %3682 = shalt.err (!%p3679_p3)
}
 0x102   : > { %p4741_p8 = scmp.ne.s32.totalorder %s4727_s17, 0  ;;  %s4742_s15 = scalar_lea.sflag [#allocation14], %s4032_s20 }
 0x103   : > { %s4308_s26 = scalar_lea.hbm %s4687_s8, %s4250_s23  ;;  %s532_s12 = scalar_lea.vmem [#allocation18], %s4035_s14 }
 0x104   : > { %3274 = dma.hbm_to_vmem [thread:$0]  (!%p4741_p8), %s4282_s24, 16, %s502_s22, %s4742_s15  }
 0x105   : > { %s539_s19 = sshll.u32 %s532_s12, 4  ;;  %s3683_s3 = scalar_lea.hbm %s4308_s26, 16  ;;  %s540_s19 = int_to_ptr.vmem [resolvable:$true] %s539_s19 }
 0x106   : > { %p3684_p9 = scmp.ne.s32.totalorder %s4308_s26, %s3683_s3  ;;  %s3688_s24 = scalar_lea.hbm %s4687_s8, 32 }
 0x107   : > { %p3689_p5 = scmp.lt.u32.totalorder %s4308_s26, %s4687_s8  ;;  %p3690_p11 = scmp.lt.u32.totalorder %s3688_s24, %s3683_s3 }
 0x108   : > { %p3686_p6 = pnand %p3684_p9, %p4066_p13  ;;  %p3692_p0 = scmp.lt.u32.totalorder %s3683_s3, %s4308_s26 }
 0x109   : > { %p3691_p7 = por %p3690_p11, %p3689_p5 }
 0x10a   : > { %p3687_p1 = pneg %p3686_p6 }
 0x10b   : > { %p3693_p12 = por %p3692_p0, %p3691_p7 }
 0x10d   : > { %p3694_p2 = pnand %p3693_p12, %p3687_p1 }
 0x10f   : > { %3697 = shalt.err (!%p3694_p2)
}
 0x110   : > { %s3698_s18 = scalar_lea.vmem %s540_s19, 16  ;;  %s3856_s1 = smov [#allocation18]  }
 0x111   : > { %p3699_p4 = scmp.ne.s32.totalorder %s540_s19, %s3698_s18  ;;  %s3703_s5 = sshll.u32 %s3856_s1, 4  ;;  %s3704_s5 = int_to_ptr.vmem [resolvable:$false] %s3703_s5 }
 0x112   : > { %s3705_s15 = scalar_lea.vmem %s3704_s5, 32  ;;  %p3706_p9 = scmp.lt.s32.totalorder %s540_s19, %s3704_s5 }
 0x113   : > { %p3701_p10 = pnand %p3699_p4, %p4066_p13  ;;  %p3707_p6 = scmp.lt.s32.totalorder %s3705_s15, %s3698_s18 }
 0x115   : > { %p3702_p3 = pneg %p3701_p10  ;;  %p3708_p8 = por %p3707_p6, %p3706_p9 }
 0x117   : > { %p3709_p5 = pnand %p3708_p8, %p3702_p3 }
 0x119   : > { %3712 = shalt.err (!%p3709_p5)
}
 0x11a   : > { %p4743_p11 = scmp.ne.s32.totalorder %s4727_s17, 0  ;;  %s4744_s16 = scalar_lea.sflag [#allocation17], %s4032_s20 }
 0x11b   : > { %s4334_s3 = scalar_lea.hbm %s4689_s10, %s4250_s23  ;;  %s570_s30 = scalar_lea.vmem [#allocation21], %s4035_s14 }
 0x11c   : > { %3280 = dma.hbm_to_vmem [thread:$0]  (!%p4743_p11), %s4308_s26, 16, %s540_s19, %s4744_s16  }
 0x11d   : > { %s577_s28 = sshll.u32 %s570_s30, 4  ;;  %s3713_s24 = scalar_lea.hbm %s4334_s3, 16  ;;  %s578_s28 = int_to_ptr.vmem [resolvable:$true] %s577_s28 }
 0x11e   : > { %p3714_p8 = scmp.ne.s32.totalorder %s4334_s3, %s3713_s24  ;;  %s3718_s26 = scalar_lea.hbm %s4689_s10, 32 }
 0x11f   : > { %p3719_p0 = scmp.lt.u32.totalorder %s4334_s3, %s4689_s10  ;;  %p3720_p12 = scmp.lt.u32.totalorder %s3718_s26, %s3713_s24 }
 0x120   : > { %p3716_p1 = pnand %p3714_p8, %p4066_p13  ;;  %p3722_p4 = scmp.lt.u32.totalorder %s3713_s24, %s4334_s3 }
 0x121   : > { %p3721_p2 = por %p3720_p12, %p3719_p0 }
 0x122   : > { %p3717_p7 = pneg %p3716_p1 }
 0x123   : > { %p3723_p10 = por %p3722_p4, %p3721_p2 }
 0x125   : > { %p3724_p3 = pnand %p3723_p10, %p3717_p7 }
 0x127   : > { %3727 = shalt.err (!%p3724_p3)
}
 0x128   : > { %s3728_s14 = scalar_lea.vmem %s578_s28, 16  ;;  %s3857_s23 = smov [#allocation21]  }
 0x129   : > { %p3729_p9 = scmp.ne.s32.totalorder %s578_s28, %s3728_s14  ;;  %s3733_s1 = sshll.u32 %s3857_s23, 4  ;;  %s3734_s1 = int_to_ptr.vmem [resolvable:$false] %s3733_s1 }
 0x12a   : > { %s3735_s5 = scalar_lea.vmem %s3734_s1, 32  ;;  %p3736_p8 = scmp.lt.s32.totalorder %s578_s28, %s3734_s1 }
 0x12b   : > { %p3731_p6 = pnand %p3729_p9, %p4066_p13  ;;  %p3737_p1 = scmp.lt.s32.totalorder %s3735_s5, %s3728_s14 }
 0x12d   : > { %p3732_p5 = pneg %p3731_p6  ;;  %p3738_p11 = por %p3737_p1, %p3736_p8 }
 0x12f   : > { %p3739_p0 = pnand %p3738_p11, %p3732_p5 }
 0x131   : > { %3742 = shalt.err (!%p3739_p0)
}
 0x132   : > { %p4745_p12 = scmp.ne.s32.totalorder %s4727_s17, 0  ;;  %s4746_s15 = sld [smem:[#allocation35_spill]] }
 0x134   : > { %3286 = dma.hbm_to_vmem [thread:$0]  (!%p4745_p12), %s4334_s3, 16, %s578_s28, %s547_s13  }
 0x138   : > { %p4747_p7 = scmp.ne.s32.totalorder %s4746_s15, 0 }
 0x139   : > { %s4748_s21 = sld [smem:[#allocation33_spill]] (!%p4747_p7) }
 0x13a   : > { %586 = sbr.rel (%p4747_p7) target bundleno = 4847 (0x12ef), region = 68 }
 0x13f   : > { %p4749_p13 = scmp.eq.s32.totalorder (!%p4747_p7), %s4748_s21, 0 }
 0x141   : > { %3794 = dma.done.wait (%p4749_p13), [#allocation5], 256   ;;  %p4750_p2 = pmov %p4749_p13 }
 0x143   : > { %3796 = vsyncadd (%p4750_p2), [#allocation5], 4294967040  ;;  %p4751_p4 = pmov %p4750_p2 }
 0x144   : > { %p4752_p11 = pmov %p4750_p2 }
 0x145   : > { %3798 = dma.done.wait (%p4751_p4), [#allocation8], 32  }
 0x146   : > { %3800 = vsyncadd (%p4752_p11), [#allocation8], 4294967264  ;;  %s4753_s17 = sld [smem:[#allocation30_spill]]  ;;  %s4754_s20 = sld [smem:[#allocation34_spill]] }
 0x147   : > { %s600_s16 = sand.u32 1, %s4748_s21  }
 0x148   : > { %s601_s12 = scalar_lea.sflag [#allocation11], %s600_s16 }
 0x14c   : > { %s4368_s13 = sand.u32 1, %s4753_s17   ;;  %p4755_p10 = scmp.ne.s32.totalorder %s4754_s20, 0 }
 0x14d   : > { %s2936_s27 = sshll.u32 %s4368_s13, 5 }
 0x14e   : > { %s4371_s3 = scalar_lea.vmem [#allocation10], %s2936_s27 }
 0x14f   : > { %3802 = dma.done.wait (%p4755_p10), %s601_s12, 528  }
 0x150   : > { %3804 = vsyncadd (%p4755_p10), %s601_s12, 4294966768  ;;  %s612_s30 = scalar_lea.vmem [#allocation12], %s4368_s13  ;;  %s618_s28 = scalar_lea.sflag [#allocation14], %s600_s16 }
 0x151   : > { %s4378_s24 = scalar_lea.vmem [#allocation13], %s2936_s27 }
 0x152   : > { %3806 = dma.done.wait (%p4755_p10), %s618_s28, 528  }
 0x153   : > { %3808 = vsyncadd (%p4755_p10), %s618_s28, 4294966768  ;;  %s629_s22 = scalar_lea.vmem [#allocation15], %s4368_s13  ;;  %s635_s29 = scalar_lea.sflag [#allocation17], %s600_s16 }
 0x154   : > { %s4385_s26 = scalar_lea.vmem [#allocation16], %s2936_s27 }
 0x155   : > { %3810 = dma.done.wait (%p4755_p10), %s635_s29, 528  }
 0x156   : > { %3812 = vsyncadd (%p4755_p10), %s635_s29, 4294966768  ;;  %s2939_s19 = sshll.u32 %s4368_s13, 6  ;;  %s646_s18 = scalar_lea.vmem [#allocation18], %s4368_s13 }
 0x157   : > { %s652_s14 = scalar_lea.sflag [#allocation20], %s600_s16  ;;  %s4393_s23 = scalar_lea.vmem [#allocation19], %s2939_s19 }
 0x158   : > { %3814 = dma.done.wait (%p4755_p10), %s652_s14, 1040  }
 0x159   : > { %3816 = vsyncadd (%p4755_p10), %s652_s14, 4294966256  ;;  %s663_s1 = scalar_lea.vmem [#allocation21], %s4368_s13  ;;  %s4756_s5 = sld [smem:[#allocation31_spill]] }
 0x15f   : > { %p2940_p3 = scmp.ne.s32.totalorder %s4756_s5, 0 }
 0x160   : > { %v736_v0 = vld [vmem:[#allocation4] sm:$0xff] (!%p2940_p3)  ;;  %vm738_vm0 = vcmask (!%p2940_p3), 261120   ;;  %v737_v1 = vld [vmem:[#allocation4 + $0x8] sm:$0xff] (!%p2940_p3) }
 0x161   : > { %735 = sbr.rel (%p2940_p3) target bundleno = 360 (0x168), region = 116  ;;  %739 = vst.msk [vmem:[#allocation2] sm:$0xff] (!%p2940_p3), %vm738_vm0, %v736_v0  ;;  %740 = vst.msk [vmem:[#allocation2 + $0x8] sm:$0xff] (!%p2940_p3), %vm738_vm0, %v737_v1 }
 0x168 PF: > { %v4401_v2 = vld [vmem:[#allocation2] sm:$0xff]  ;;  %vm746_vm1 = vcmask 261120   ;;  %v4403_v3 = vld [vmem:[#allocation2 + $0x8] sm:$0xff]  ;;  %v792_v18 = vld [vmem:[%s4371_s3 + $0x10] sm:$0xff]  ;;  %v3858_v38 = vmov 0.0   ;;  %vm3859_vm2 = vmmov 0   ;;  %v882_v46 = vlaneseq }
 0x169   : > { %v747_v4 = vsel %vm746_vm1, %v4401_v2, 0.0  ;;  %v750_v5 = vsel %vm746_vm1, %v4403_v3, 0.0  ;;  %v790_v16 = vld [vmem:[%s4371_s3] sm:$0xff]  ;;  %v791_v17 = vld [vmem:[%s4371_s3 + $0x8] sm:$0xff]  ;;  %v793_v20 = vld [vmem:[%s4371_s3 + $0x18] sm:$0xff]  ;;  %3069 = vmatprep.subr.mxu0 %v3858_v38  ;;  %3071 = vmatprep.mubr.msk.f32.mxu0 %vm3859_vm2, %v3858_v38  ;;  %s3860_s15 = smov 96  }
 0x16a   : > { %748 = vadd.xlane.f32.xlu0 %v747_v4  ;;  %v3180_v19 = vpack.c.bf16 %v791_v17, %v790_v16  ;;  %v3184_v21 = vpack.c.bf16 %v793_v20, %v792_v18  ;;  %v4417_v29 = vld [vmem:[#allocation7] ss:$0 sm:$0xff]  ;;  %v4419_v31 = vld [vmem:[#allocation9] ss:$0 sm:$0xff]  ;;  %vm891_vm3 = vcmask 64512   ;;  %v883_v47 = vshrl.u32 %v882_v46, 7 }
 0x16b   : > { %v2943_v39 = vld [vmem:[%s612_s30] ss:$0 sm:$0xff]  ;;  %v885_v48 = vand.u32 127, %v882_v46  ;;  %s3861_s21 = smov 64   ;;  %s3862_s17 = smov 88   ;;  %vm2252_vm5 = vcmask 195584  }
 0x16c   : > { %3181 = vmatprep.subr.bf16.mxu1 %v3180_v19  ;;  %s3863_s20 = smov 120   ;;  %s3864_s16 = smov 56   ;;  %vm2249_vm6 = vcmask 130048   ;;  %vm2543_vm9 = vcmask 523264  }
 0x16d   : > { %3183 = vmatpush3.bf16.msra.mxu1 %v3180_v19  ;;  %vm886_vm4 = vcmp.gt.s32.totalorder %v885_v48, %v883_v47  ;;  %s3865_s27 = smov 80   ;;  %s3866_s12 = smov 112  }
 0x16e   : > { %751 = vadd.xlane.f32.xlu0 %v750_v5  ;;  %3185 = vmatprep.subr.bf16.mxu1 %v3184_v21  ;;  %v4454_v50 = vsel %vm886_vm4, -1e+09, %v3858_v38  ;;  %s3867_s3 = smov 48   ;;  %s3868_s30 = smov 72  }
 0x16f   : > { %s3869_s28 = smov 104   ;;  %s3870_s29 = smov 40  }
 0x170   : > { %s3871_s19 = smov 8   ;;  %s3872_s14 = smov 16  }
 0x171   : > { %3187 = vmatpush3.bf16.msra.mxu1 %v3184_v21  ;;  %s3873_s5 = smov 24  }
 0x172   : > { %3059 = vmatprep.subr.mxu1 %v3858_v38 }
 0x1f7   : > { %v749_v6 = vpop.xlane.xlu0 %748 }
 0x1f8   : > { %v754_v7 = vmul.f32 0.03125, %v749_v6 }
 0x1fa   : > { %v756_v8 = vsub.f32 %v4401_v2, %v754_v7 }
 0x1fb   : > { %v752_v9 = vpop.xlane.xlu0 %751 }
 0x1fc   : > { %v755_v10 = vmul.f32 0.03125, %v752_v9  ;;  %v758_v11 = vmul.f32 %v756_v8, %v756_v8 }
 0x1fe   : > { %v757_v12 = vsub.f32 %v4403_v3, %v755_v10  ;;  %v760_v13 = vsel %vm746_vm1, %v758_v11, 0.0 }
 0x1ff   : > { %761 = vadd.xlane.f32.xlu1 %v760_v13 }
 0x200   : > { %v759_v14 = vmul.f32 %v757_v12, %v757_v12 }
 0x202   : > { %v763_v15 = vsel %vm746_vm1, %v759_v14, 0.0 }
 0x203   : > { %764 = vadd.xlane.f32.xlu1 %v763_v15 }
 0x28c   : > { %v762_v22 = vpop.xlane.xlu1 %761 }
 0x28d   : > { %v766_v23 = vmul.f32 0.03125, %v762_v22 }
 0x28f   : > { %v768_v24 = vadd.f32 1e-05, %v766_v23 }
 0x290   : > { %v765_v25 = vpop.xlane.xlu1 %764 }
 0x291   : > { %3367 = vrsqrt.f32 %v768_v24  ;;  %v767_v26 = vmul.f32 0.03125, %v765_v25 }
 0x293   : > { %v769_v27 = vadd.f32 1e-05, %v767_v26 }
 0x295   : > { %3369 = vrsqrt.f32 %v769_v27 }
 0x29b   : > { %v3368_v28 = vpop.eup %3367 }
 0x29c   : > { %v772_v30 = vmul.f32 %v3368_v28, %v756_v8 }
 0x29e   : > { %v780_v32 = vmul.f32 %v4417_v29, %v772_v30 }
 0x29f   : > { %v3370_v33 = vpop.eup %3369 }
 0x2a0   : > { %v788_v34 = vadd.f32 %v4419_v31, %v780_v32  ;;  %v773_v35 = vmul.f32 %v3370_v33, %v757_v12 }
 0x2a2   : > { %3056 = vmatprep.mubr.msk.f32.mxu1 %vm746_vm1, %v788_v34  ;;  %v781_v36 = vmul.f32 %v4417_v29, %v773_v35 }
 0x2a4   : > { %v789_v37 = vadd.f32 %v4419_v31, %v781_v36 }
 0x2a6   : > { %3057 = vmatmul.mubr.msk.f32.vlgmr.msra.gmra.mrb[0].mxu1 %vm746_vm1, %v789_v37 }
 0x2a7   : > { %3061 = vmatprep.mubr.msk.f32.mxu1 %vm3859_vm2, %v3858_v38 }
 0x379   : > { %v3058_v40 = vpop.f32.mrb[0].mxu1 }
 0x37a   : > { %v4435_v41 = vadd.f32 %v3058_v40, %v2943_v39  ;;  %v873_v42 = vpop.f32.mrb[1].mxu1 }
 0x37b   : > { %v4437_v43 = vadd.f32 %v2943_v39, %v873_v42 }
 0x37c   : > { %967 = vrot.lane.b32.xlu1 %v4435_v41, %s3860_s15 }
 0x37d   : > { %889 = vrot.lane.b32.xlu0 %v4437_v43, %s3860_s15 }
 0x3ee   : > { %v968_v45 = vpop.permute.xlu1 %967 }
 0x3ef   : > { %v890_v44 = vpop.permute.xlu0 %889 }
 0x3f0   : > { %3060 = vmatpush3.xpose.msk.msra.mxu1 %vm891_vm3, %v890_v44 }
 0x3f1   : > { %3064 = vmatprep.subr.mxu1 %v3858_v38 }
 0x3f3   : > { %3062 = vmatmul.mubr.msk.f32.vlgmr.msra.gmra.mrb[2].mxu1 %vm891_vm3, %v4437_v43 }
 0x3f4   : > { %3065 = vmatpush3.xpose.msk.msra.mxu1 %vm891_vm3, %v968_v45  ;;  %3066 = vmatprep.mubr.msk.f32.mxu1 %vm3859_vm2, %v3858_v38 }
 0x3f5   : > { %3074 = vmatprep.subr.mxu1 %v3858_v38 }
 0x3f7   : > { %3067 = vmatmul.mubr.msk.f32.vlgmr.msra.gmra.mrb[4].mxu1 %vm891_vm3, %v4435_v41 }
 0x3f8   : > { %3076 = vmatprep.mubr.msk.f32.mxu1 %vm3859_vm2, %v3858_v38 }
 0x4c6   : > { %v962_v49 = vpop.f32.mrb[2].mxu1 }
 0x4c7   : > { %v1043_v51 = vmul.f32 0.35355338, %v962_v49  ;;  %v3063_v52 = vpop.f32.mrb[3].mxu1 }
 0x4c9   : > { %v1045_v53 = vadd.f32 %v1043_v51, %v4454_v50 }
 0x4ca   : > { %v1039_v54 = vpop.f32.mrb[4].mxu1 }
 0x4cb   : > { %v1044_v55 = vmul.f32 0.35355338, %v1039_v54  ;;  %v3068_v56 = vpop.f32.mrb[5].mxu1  ;;  %v1047_v57 = vsel %vm891_vm3, %v1045_v53, -inf }
 0x4cc   : > { %1048 = vmax.xlane.f32.xlu1 %v1047_v57 }
 0x4cd   : > { %v1046_v58 = vadd.f32 %v1044_v55, %v4454_v50 }
 0x4cf   : > { %v1050_v59 = vsel %vm891_vm3, %v1046_v58, -inf }
 0x4d0   : > { %1051 = vmax.xlane.f32.xlu0 %v1050_v59 }
 0x4dd   : > { %1145 = vrot.lane.b32.xlu1 %v4435_v41, %s3861_s21 }
 0x4e1   : > { %1223 = vrot.lane.b32.xlu1 %v4437_v43, %s3862_s17 }
 0x4e5   : > { %1301 = vrot.lane.b32.xlu1 %v4435_v41, %s3862_s17 }
 0x4e6   : > { %1069 = vrot.lane.b32.xlu0 %v4437_v43, %s3861_s21 }
 0x559   : > { %v1049_v60 = vpop.xlane.xlu1 %1048 }
 0x55a   : > { %v1053_v61 = vsub.f32 %v1045_v53, %v1049_v60 }
 0x55c   : > { %v1055_v62 = vmul.f32 1.442695, %v1053_v61 }
 0x55d   : > { %v1146_v63 = vpop.permute.xlu1 %1145  ;;  %v1052_v0 = vpop.xlane.xlu0 %1051 }
 0x55e   : > { %3371 = vpow2.f32 %v1055_v62  ;;  %v1054_v1 = vsub.f32 %v1046_v58, %v1052_v0  ;;  %3075 = vmatpush3.msra.mxu1 %v1146_v63 }
 0x55f   : > { %3084 = vmatprep.subr.mxu1 %v3858_v38 }
 0x560   : > { %v1057_v4 = vmul.f32 1.442695, %v1054_v1 }
 0x561   : > { %v1070_v5 = vpop.permute.xlu0 %1069  ;;  %v1224_v10 = vpop.permute.xlu1 %1223 }
 0x562   : > { %3373 = vpow2.f32 %v1057_v4  ;;  %3070 = vmatpush3.msra.mxu0 %v1070_v5 }
 0x563   : > { %3079 = vmatprep.subr.mxu0 %v3858_v38 }
 0x565   : > { %v1302_v11 = vpop.permute.xlu1 %1301 }
 0x568   : > { %v3372_v6 = vpop.eup %3371 }
 0x569   : > { %v1059_v7 = vsel %vm891_vm3, %v3372_v6, 0.0 }
 0x56a   : > { %1060 = vadd.xlane.f32.xlu0 %v1059_v7 }
 0x56c   : > { %v3374_v8 = vpop.eup %3373 }
 0x56d   : > { %v1062_v9 = vsel %vm891_vm3, %v3374_v8, 0.0 }
 0x56e   : > { %1063 = vadd.xlane.f32.xlu1 %v1062_v9 }
 0x57f   : > { %1299 = vrot.lane.b32.xlu1 %v4435_v41, %s3863_s20 }
 0x580   : > { %1221 = vrot.lane.b32.xlu0 %v4437_v43, %s3863_s20 }
 0x5f7   : > { %v1061_v12 = vpop.xlane.xlu0 %1060 }
 0x5f8   : > { %3375 = vrcp.f32 %v1061_v12 }
 0x5fb   : > { %v1064_v13 = vpop.xlane.xlu1 %1063  ;;  %v1222_v18 = vpop.permute.xlu0 %1221 }
 0x5fc   : > { %3377 = vrcp.f32 %v1064_v13 }
 0x5ff   : > { %v1300_v19 = vpop.permute.xlu1 %1299 }
 0x602   : > { %v3376_v14 = vpop.eup %3375 }
 0x603   : > { %v1067_v15 = vmul.f32 %v3376_v14, %v3372_v6 }
 0x605   : > { %3072 = vmatmul.mubr.msk.f32.vlgmr.msra.gmra.mrb[0].mxu0 %vm891_vm3, %v1067_v15 }
 0x606   : > { %v3378_v16 = vpop.eup %3377  ;;  %3080 = vmatpush3.xpose.msk.msra.mxu0 %vm891_vm3, %v1224_v10  ;;  %3081 = vmatprep.mubr.msk.f32.mxu0 %vm3859_vm2, %v3858_v38 }
 0x607   : > { %v1068_v17 = vmul.f32 %v3378_v16, %v3374_v8  ;;  %3089 = vmatprep.subr.mxu0 %v3858_v38 }
 0x609   : > { %3077 = vmatmul.mubr.msk.f32.vlgmr.msra.gmra.mrb[6].mxu1 %vm891_vm3, %v1068_v17  ;;  %3082 = vmatmul.mubr.msk.f32.vlgmr.msra.gmra.mrb[2].mxu0 %vm891_vm3, %v1222_v18 }
 0x60a   : > { %3085 = vmatpush3.xpose.msk.msra.mxu1 %vm891_vm3, %v1302_v11  ;;  %3086 = vmatprep.mubr.msk.f32.mxu1 %vm3859_vm2, %v3858_v38 }
 0x60b   : > { %3094 = vmatprep.subr.mxu1 %v3858_v38  ;;  %3091 = vmatprep.mubr.msk.f32.mxu0 %vm3859_vm2, %v3858_v38 }
 0x60d   : > { %3087 = vmatmul.mubr.msk.f32.vlgmr.msra.gmra.mrb[8].mxu1 %vm891_vm3, %v1300_v19 }
 0x60e   : > { %3096 = vmatprep.mubr.msk.f32.mxu1 %vm3859_vm2, %v3858_v38 }
 0x6d8   : > { %v4486_v20 = vpop.f32.mrb[0].mxu0 }
 0x6d9   : > { %v3073_v21 = vpop.f32.mrb[1].mxu0 }
 0x6dc   : > { %v4488_v22 = vpop.f32.mrb[6].mxu1  ;;  %v1295_v23 = vpop.f32.mrb[2].mxu0 }
 0x6dd   : > { %v1377_v24 = vmul.f32 0.35355338, %v1295_v23  ;;  %v3078_v25 = vpop.f32.mrb[7].mxu1  ;;  %v3083_v26 = vpop.f32.mrb[3].mxu0 }
 0x6df   : > { %v1379_v27 = vadd.f32 %v1377_v24, %v4454_v50 }
 0x6e0   : > { %v1373_v28 = vpop.f32.mrb[8].mxu1 }
 0x6e1   : > { %v1378_v30 = vmul.f32 0.35355338, %v1373_v28  ;;  %v3088_v32 = vpop.f32.mrb[9].mxu1  ;;  %v1381_v33 = vsel %vm891_vm3, %v1379_v27, -inf }
 0x6e2   : > { %1382 = vmax.xlane.f32.xlu0 %v1381_v33 }
 0x6e3   : > { %v1380_v34 = vadd.f32 %v1378_v30, %v4454_v50 }
 0x6e5   : > { %v1384_v35 = vsel %vm891_vm3, %v1380_v34, -inf }
 0x6e6   : > { %1385 = vmax.xlane.f32.xlu1 %v1384_v35 }
 0x6f7   : > { %1479 = vrot.lane.b32.xlu1 %v4435_v41, %s3864_s16 }
 0x6f8   : > { %1403 = vrot.lane.b32.xlu0 %v4437_v43, %s3864_s16 }
 0x6fb   : > { %1557 = vrot.lane.b32.xlu1 %v4437_v43, %s3865_s27 }
 0x6ff   : > { %1635 = vrot.lane.b32.xlu1 %v4435_v41, %s3865_s27 }
 0x703   : > { %1633 = vrot.lane.b32.xlu1 %v4435_v41, %s3866_s12 }
 0x76f   : > { %v1383_v36 = vpop.xlane.xlu0 %1382 }
 0x770   : > { %v1387_v37 = vsub.f32 %v1379_v27, %v1383_v36 }
 0x772   : > { %v1389_v39 = vmul.f32 1.442695, %v1387_v37 }
 0x773   : > { %v1404_v40 = vpop.permute.xlu0 %1403  ;;  %v1386_v42 = vpop.xlane.xlu1 %1385 }
 0x774   : > { %3379 = vpow2.f32 %v1389_v39  ;;  %v1388_v44 = vsub.f32 %v1380_v34, %v1386_v42  ;;  %3090 = vmatpush3.msra.mxu0 %v1404_v40 }
 0x775   : > { %3099 = vmatprep.subr.mxu0 %v3858_v38 }
 0x776   : > { %v1391_v45 = vmul.f32 1.442695, %v1388_v44 }
 0x777   : > { %v1480_v46 = vpop.permute.xlu1 %1479 }
 0x778   : > { %3381 = vpow2.f32 %v1391_v45  ;;  %3095 = vmatpush3.msra.mxu1 %v1480_v46 }
 0x779   : > { %3104 = vmatprep.subr.mxu1 %v3858_v38 }
 0x77b   : > { %v1558_v54 = vpop.permute.xlu1 %1557 }
 0x77e   : > { %v3380_v47 = vpop.eup %3379 }
 0x77f   : > { %v1393_v48 = vsel %vm891_vm3, %v3380_v47, 0.0  ;;  %v1636_v58 = vpop.permute.xlu1 %1635 }
 0x780   : > { %1394 = vadd.xlane.f32.xlu0 %v1393_v48 }
 0x782   : > { %v3382_v49 = vpop.eup %3381 }
 0x783   : > { %v1396_v51 = vsel %vm891_vm3, %v3382_v49, 0.0  ;;  %v1634_v61 = vpop.permute.xlu1 %1633 }
 0x784   : > { %1397 = vadd.xlane.f32.xlu0 %v1396_v51 }
 0x79a   : > { %1555 = vrot.lane.b32.xlu0 %v4437_v43, %s3866_s12 }
 0x80d   : > { %v1395_v52 = vpop.xlane.xlu0 %1394 }
 0x80e   : > { %3383 = vrcp.f32 %v1395_v52 }
 0x811   : > { %v1398_v53 = vpop.xlane.xlu0 %1397 }
 0x812   : > { %3385 = vrcp.f32 %v1398_v53 }
 0x815   : > { %v1556_v60 = vpop.permute.xlu0 %1555 }
 0x818   : > { %v3384_v55 = vpop.eup %3383 }
 0x819   : > { %v1401_v56 = vmul.f32 %v3384_v55, %v3380_v47 }
 0x81b   : > { %3092 = vmatmul.mubr.msk.f32.vlgmr.msra.gmra.mrb[4].mxu0 %vm891_vm3, %v1401_v56 }
 0x81c   : > { %v3386_v57 = vpop.eup %3385  ;;  %3100 = vmatpush3.xpose.msk.msra.mxu0 %vm891_vm3, %v1558_v54  ;;  %3101 = vmatprep.mubr.msk.f32.mxu0 %vm3859_vm2, %v3858_v38 }
 0x81d   : > { %v1402_v59 = vmul.f32 %v3386_v57, %v3382_v49  ;;  %3109 = vmatprep.subr.mxu0 %v3858_v38 }
 0x81f   : > { %3097 = vmatmul.mubr.msk.f32.vlgmr.msra.gmra.mrb[10].mxu1 %vm891_vm3, %v1402_v59  ;;  %3102 = vmatmul.mubr.msk.f32.vlgmr.msra.gmra.mrb[6].mxu0 %vm891_vm3, %v1556_v60 }
 0x820   : > { %3105 = vmatpush3.xpose.msk.msra.mxu1 %vm891_vm3, %v1636_v58  ;;  %3106 = vmatprep.mubr.msk.f32.mxu1 %vm3859_vm2, %v3858_v38 }
 0x821   : > { %3114 = vmatprep.subr.mxu1 %v3858_v38  ;;  %3111 = vmatprep.mubr.msk.f32.mxu0 %vm3859_vm2, %v3858_v38 }
 0x823   : > { %3107 = vmatmul.mubr.msk.f32.vlgmr.msra.gmra.mrb[12].mxu1 %vm891_vm3, %v1634_v61 }
 0x824   : > { %3116 = vmatprep.mubr.msk.f32.mxu1 %vm3859_vm2, %v3858_v38 }
 0x8ee   : > { %v4520_v62 = vpop.f32.mrb[4].mxu0 }
 0x8ef   : > { %v3093_v63 = vpop.f32.mrb[5].mxu0 }
 0x8f2   : > { %v4522_v0 = vpop.f32.mrb[10].mxu1  ;;  %v1629_v1 = vpop.f32.mrb[6].mxu0 }
 0x8f3   : > { %v1711_v4 = vmul.f32 0.35355338, %v1629_v1  ;;  %v3098_v5 = vpop.f32.mrb[11].mxu1  ;;  %v3103_v6 = vpop.f32.mrb[7].mxu0 }
 0x8f5   : > { %v1713_v7 = vadd.f32 %v1711_v4, %v4454_v50 }
 0x8f6   : > { %v1707_v8 = vpop.f32.mrb[12].mxu1 }
 0x8f7   : > { %v1712_v9 = vmul.f32 0.35355338, %v1707_v8  ;;  %v3108_v10 = vpop.f32.mrb[13].mxu1  ;;  %v1715_v11 = vsel %vm891_vm3, %v1713_v7, -inf }
 0x8f8   : > { %1716 = vmax.xlane.f32.xlu0 %v1715_v11  ;;  %v2255_v11 = vld [vmem:[%s4378_s24] sm:$0xff] }
 0x8f9   : > { %v1714_v12 = vadd.f32 %v1712_v9, %v4454_v50 }
 0x8fb   : > { %v1718_v13 = vsel %vm891_vm3, %v1714_v12, -inf }
 0x8fc   : > { %1719 = vmax.xlane.f32.xlu1 %v1718_v13  ;;  %v2257_v13 = vld [vmem:[%s4378_s24 + $0x10] sm:$0xff] }
 0x90d   : > { %1813 = vrot.lane.b32.xlu1 %v4435_v41, %s3867_s3 }
 0x90e   : > { %1737 = vrot.lane.b32.xlu0 %v4437_v43, %s3867_s3 }
 0x911   : > { %1891 = vrot.lane.b32.xlu1 %v4437_v43, %s3868_s30 }
 0x915   : > { %1969 = vrot.lane.b32.xlu1 %v4435_v41, %s3868_s30 }
 0x919   : > { %1967 = vrot.lane.b32.xlu1 %v4435_v41, %s3869_s28 }
 0x985   : > { %v1717_v14 = vpop.xlane.xlu0 %1716 }
 0x986   : > { %v1721_v15 = vsub.f32 %v1713_v7, %v1717_v14  ;;  %v2258_v14 = vld [vmem:[%s4378_s24 + $0x18] sm:$0xff] }
 0x988   : > { %v1723_v16 = vmul.f32 1.442695, %v1721_v15  ;;  %v3192_v15 = vpack.c.bf16 %v2258_v14, %v2257_v13  ;;  %v2529_v13 = vld [vmem:[%s4393_s23 + $0x8] sm:$0xff] }
 0x989   : > { %v1738_v17 = vpop.permute.xlu0 %1737  ;;  %v1720_v18 = vpop.xlane.xlu1 %1719 }
 0x98a   : > { %3387 = vpow2.f32 %v1723_v16  ;;  %v1722_v19 = vsub.f32 %v1714_v12, %v1720_v18  ;;  %3110 = vmatpush3.msra.mxu0 %v1738_v17  ;;  %v2256_v12 = vld [vmem:[%s4378_s24 + $0x8] sm:$0xff]  ;;  %s743_s24 = sld [smem:[#allocation3]] }
 0x98b   : > { %3119 = vmatprep.subr.mxu0 %v3858_v38 }
 0x98c   : > { %v1725_v21 = vmul.f32 1.442695, %v1722_v19 }
 0x98d   : > { %v1814_v23 = vpop.permute.xlu1 %1813 }
 0x98e   : > { %3389 = vpow2.f32 %v1725_v21  ;;  %3115 = vmatpush3.msra.mxu1 %v1814_v23 }
 0x98f   : > { %3124 = vmatprep.subr.mxu1 %v3858_v38 }
 0x991   : > { %v1892_v32 = vpop.permute.xlu1 %1891 }
 0x994   : > { %v3388_v24 = vpop.eup %3387 }
 0x995   : > { %v1727_v25 = vsel %vm891_vm3, %v3388_v24, 0.0  ;;  %v1970_v36 = vpop.permute.xlu1 %1969 }
 0x996   : > { %1728 = vadd.xlane.f32.xlu0 %v1727_v25 }
 0x998   : > { %v3390_v26 = vpop.eup %3389 }
 0x999   : > { %v1730_v27 = vsel %vm891_vm3, %v3390_v26, 0.0  ;;  %v1968_v40 = vpop.permute.xlu1 %1967 }
 0x99a   : > { %1731 = vadd.xlane.f32.xlu0 %v1730_v27 }
 0x9b0   : > { %1889 = vrot.lane.b32.xlu0 %v4437_v43, %s3869_s28 }
 0xa23   : > { %v1729_v28 = vpop.xlane.xlu0 %1728 }
 0xa24   : > { %3391 = vrcp.f32 %v1729_v28 }
 0xa27   : > { %v1732_v30 = vpop.xlane.xlu0 %1731 }
 0xa28   : > { %3393 = vrcp.f32 %v1732_v30 }
 0xa2b   : > { %v1890_v39 = vpop.permute.xlu0 %1889 }
 0xa2e   : > { %v3392_v33 = vpop.eup %3391 }
 0xa2f   : > { %v1735_v34 = vmul.f32 %v3392_v33, %v3388_v24 }
 0xa31   : > { %3112 = vmatmul.mubr.msk.f32.vlgmr.msra.gmra.mrb[8].mxu0 %vm891_vm3, %v1735_v34 }
 0xa32   : > { %v3394_v35 = vpop.eup %3393  ;;  %3120 = vmatpush3.xpose.msk.msra.mxu0 %vm891_vm3, %v1892_v32  ;;  %3121 = vmatprep.mubr.msk.f32.mxu0 %vm3859_vm2, %v3858_v38 }
 0xa33   : > { %v1736_v37 = vmul.f32 %v3394_v35, %v3390_v26  ;;  %3129 = vmatprep.subr.mxu0 %v3858_v38 }
 0xa35   : > { %3117 = vmatmul.mubr.msk.f32.vlgmr.msra.gmra.mrb[14].mxu1 %vm891_vm3, %v1736_v37  ;;  %3122 = vmatmul.mubr.msk.f32.vlgmr.msra.gmra.mrb[10].mxu0 %vm891_vm3, %v1890_v39 }
 0xa36   : > { %3125 = vmatpush3.xpose.msk.msra.mxu1 %vm891_vm3, %v1970_v36  ;;  %3126 = vmatprep.mubr.msk.f32.mxu1 %vm3859_vm2, %v3858_v38  ;;  %v2970_v36 = vld [vmem:[%s629_s22] ss:$0 sm:$0xff]  ;;  %s4757_s22 = sld [smem:[#allocation31_spill]] }
 0xa37   : > { %3134 = vmatprep.subr.mxu1 %v3858_v38  ;;  %3131 = vmatprep.mubr.msk.f32.mxu0 %vm3859_vm2, %v3858_v38 }
 0xa39   : > { %3127 = vmatmul.mubr.msk.f32.vlgmr.msra.gmra.mrb[16].mxu1 %vm891_vm3, %v1968_v40 }
 0xa3a   : > { %3136 = vmatprep.mubr.msk.f32.mxu1 %vm3859_vm2, %v3858_v38 }
 0xa3c   : > { %p2979_p9 = scmp.ne.s32.totalorder %s4757_s22, 1 }
 0xb04   : > { %v1809_v42 = vpop.f32.mrb[8].mxu0 }
 0xb05   : > { %v3113_v44 = vpop.f32.mrb[9].mxu0 }
 0xb08   : > { %v1885_v45 = vpop.f32.mrb[14].mxu1  ;;  %v1963_v46 = vpop.f32.mrb[10].mxu0 }
 0xb09   : > { %v2045_v47 = vmul.f32 0.35355338, %v1963_v46  ;;  %v3118_v48 = vpop.f32.mrb[15].mxu1  ;;  %v3123_v49 = vpop.f32.mrb[11].mxu0 }
 0xb0b   : > { %v2047_v51 = vadd.f32 %v2045_v47, %v4454_v50 }
 0xb0c   : > { %v2041_v52 = vpop.f32.mrb[16].mxu1 }
 0xb0d   : > { %v2046_v53 = vmul.f32 0.35355338, %v2041_v52  ;;  %v3128_v54 = vpop.f32.mrb[17].mxu1  ;;  %v2049_v55 = vsel %vm891_vm3, %v2047_v51, -inf }
 0xb0e   : > { %2050 = vmax.xlane.f32.xlu0 %v2049_v55 }
 0xb0f   : > { %v2048_v56 = vadd.f32 %v2046_v53, %v4454_v50 }
 0xb11   : > { %v2052_v57 = vsel %vm891_vm3, %v2048_v56, -inf }
 0xb12   : > { %2053 = vmax.xlane.f32.xlu1 %v2052_v57 }
 0xb23   : > { %2147 = vrot.lane.b32.xlu1 %v4435_v41, %s3870_s29 }
 0xb27   : > { %2225 = vrot.lane.b32.xlu1 %v4520_v62, %s3871_s19 }
 0xb2b   : > { %2227 = vrot.lane.b32.xlu1 %v4522_v0, %s3871_s19 }
 0xb2f   : > { %2235 = vrot.lane.b32.xlu1 %v1885_v45, %s3872_s14 }
 0xb9b   : > { %v2051_v38 = vpop.xlane.xlu0 %2050 }
 0xb9c   : > { %v2055_v58 = vsub.f32 %v2047_v51, %v2051_v38  ;;  %v2382_v38 = vld [vmem:[%s4385_s26] sm:$0xff] }
 0xb9e   : > { %v2057_v59 = vmul.f32 1.442695, %v2055_v58  ;;  %v2383_v58 = vld [vmem:[%s4385_s26 + $0x8] sm:$0xff] }
 0xb9f   : > { %v2054_v60 = vpop.xlane.xlu1 %2053 }
 0xba0   : > { %3395 = vpow2.f32 %v2057_v59  ;;  %v2056_v50 = vsub.f32 %v2048_v56, %v2054_v60  ;;  %v3196_v59 = vpack.c.bf16 %v2383_v58, %v2382_v38  ;;  %v2384_v60 = vld [vmem:[%s4385_s26 + $0x10] sm:$0xff] }
 0xba2   : > { %v2059_v61 = vmul.f32 1.442695, %v2056_v50  ;;  %v2385_v50 = vld [vmem:[%s4385_s26 + $0x18] sm:$0xff] }
 0xba3   : > { %v2148_v63 = vpop.permute.xlu1 %2147 }
 0xba4   : > { %3397 = vpow2.f32 %v2059_v61  ;;  %3135 = vmatpush3.msra.mxu1 %v2148_v63  ;;  %v3200_v61 = vpack.c.bf16 %v2385_v50, %v2384_v60 }
 0xba5   : > { %3197 = vmatprep.subr.bf16.mxu1 %v3196_v59 }
 0xba7   : > { %v2226_v21 = vpop.permute.xlu1 %2225 }
 0xba8   : > { %v2247_v25 = vsel %vm891_vm3, %v4486_v20, %v2226_v21  ;;  %v4580_v20 = vstv %s743_s24 }
 0xbaa   : > { %v3396_v41 = vpop.eup %3395 }
 0xbab   : > { %v2061_v1 = vsel %vm891_vm3, %v3396_v41, 0.0  ;;  %v2228_v23 = vpop.permute.xlu1 %2227 }
 0xbac   : > { %2062 = vadd.xlane.f32.xlu0 %v2061_v1  ;;  %v2248_v32 = vsel %vm891_vm3, %v4488_v22, %v2228_v23  ;;  %v2534_v23 = vld [vmem:[%s4393_s23 + $0x30] sm:$0xff] }
 0xbae   : > { %v3398_v62 = vpop.eup %3397 }
 0xbaf   : > { %v2064_v4 = vsel %vm891_vm3, %v3398_v62, 0.0  ;;  %v2236_v26 = vpop.permute.xlu1 %2235 }
 0xbb0   : > { %2065 = vadd.xlane.f32.xlu0 %v2064_v4  ;;  %v2251_v33 = vsel %vm2249_vm6, %v2248_v32, %v2236_v26  ;;  %v2973_v26 = vld [vmem:[%s646_s18] ss:$0 sm:$0xff] }
 0xbc6   : > { %2071 = vrot.lane.b32.xlu0 %v4437_v43, %s3870_s29  ;;  %v3188_v43 = vpack.c.bf16 %v2256_v12, %v2255_v11 }
 0xbca   : > { %2233 = vrot.lane.b32.xlu0 %v1809_v42, %s3872_s14 }
 0xc39   : > { %v2063_v0 = vpop.xlane.xlu0 %2062 }
 0xc3a   : > { %3399 = vrcp.f32 %v2063_v0 }
 0xc3d   : > { %v2066_v5 = vpop.xlane.xlu0 %2065 }
 0xc3e   : > { %3401 = vrcp.f32 %v2066_v5 }
 0xc41   : > { %v2072_v6 = vpop.permute.xlu0 %2071 }
 0xc42   : > { %3130 = vmatpush3.msra.mxu0 %v2072_v6 }
 0xc43   : > { %3189 = vmatprep.subr.bf16.mxu0 %v3188_v43 }
 0xc44   : > { %v3400_v7 = vpop.eup %3399 }
 0xc45   : > { %v2069_v8 = vmul.f32 %v3400_v7, %v3396_v41  ;;  %v2234_v24 = vpop.permute.xlu0 %2233 }
 0xc46   : > { %v2250_v27 = vsel %vm2249_vm6, %v2247_v25, %v2234_v24  ;;  %v2535_v24 = vld [vmem:[%s4393_s23 + $0x38] sm:$0xff] }
 0xc47   : > { %3132 = vmatmul.mubr.msk.f32.vlgmr.msra.gmra.mrb[12].mxu0 %vm891_vm3, %v2069_v8  ;;  %v3216_v25 = vpack.c.bf16 %v2535_v24, %v2534_v23 }
 0xc48   : > { %v3402_v9 = vpop.eup %3401  ;;  %3191 = vmatpush3.bf16.msra.mxu0 %v3188_v43  ;;  %v2528_v43 = vld [vmem:[%s4393_s23] sm:$0xff] }
 0xc49   : > { %v2070_v10 = vmul.f32 %v3402_v9, %v3398_v62  ;;  %3193 = vmatprep.subr.bf16.mxu0 %v3192_v15  ;;  %v3204_v14 = vpack.c.bf16 %v2529_v13, %v2528_v43 }
 0xc4b   : > { %3137 = vmatmul.mubr.msk.f32.vlgmr.msra.gmra.mrb[18].mxu1 %vm891_vm3, %v2070_v10 }
 0xc4c   : > { %3195 = vmatpush3.bf16.msra.mxu0 %v3192_v15  ;;  %3199 = vmatpush3.bf16.msra.mxu1 %v3196_v59  ;;  %v2530_v15 = vld [vmem:[%s4393_s23 + $0x10] sm:$0xff] }
 0xc4d   : > { %3201 = vmatprep.subr.bf16.mxu1 %v3200_v61  ;;  %3205 = vmatprep.subr.bf16.mxu0 %v3204_v14 }
 0xc50   : > { %3203 = vmatpush3.bf16.msra.mxu1 %v3200_v61 }
 0xd1a   : > { %v2143_v16 = vpop.f32.mrb[12].mxu0 }
 0xd1b   : > { %2241 = vrot.lane.b32.xlu0 %v2143_v16, %s3873_s5  ;;  %v3133_v17 = vpop.f32.mrb[13].mxu0  ;;  %v2531_v16 = vld [vmem:[%s4393_s23 + $0x18] sm:$0xff] }
 0xd1c   : > { %v3208_v17 = vpack.c.bf16 %v2531_v16, %v2530_v15 }
 0xd1e   : > { %v2219_v18 = vpop.f32.mrb[18].mxu1 }
 0xd1f   : > { %2243 = vrot.lane.b32.xlu1 %v2219_v18, %s3873_s5  ;;  %v3138_v19 = vpop.f32.mrb[19].mxu1  ;;  %v2532_v18 = vld [vmem:[%s4393_s23 + $0x20] sm:$0xff] }
 0xd20   : > { %v2533_v19 = vld [vmem:[%s4393_s23 + $0x28] sm:$0xff] }
 0xd21   : > { %v3212_v21 = vpack.c.bf16 %v2533_v19, %v2532_v18 }
 0xd8d   : > { %v2242_v28 = vpop.permute.xlu0 %2241 }
 0xd8e   : > { %v2253_v30 = vsel %vm2252_vm5, %v2250_v27, %v2242_v28 }
 0xd8f   : > { %3147 = vmatprep.mubr.msk.f32.mxu0 %vm746_vm1, %v2253_v30 }
 0xd91   : > { %v2244_v34 = vpop.permute.xlu1 %2243 }
 0xd92   : > { %v2254_v35 = vsel %vm2252_vm5, %v2251_v33, %v2244_v34 }
 0xd93   : > { %3148 = vmatmul.mubr.msk.f32.vlgmr.msra.gmra.mrb[14].mxu0 %vm746_vm1, %v2254_v35 }
 0xd94   : > { %3207 = vmatpush3.bf16.msra.mxu0 %v3204_v14 }
 0xd95   : > { %3209 = vmatprep.subr.bf16.mxu0 %v3208_v17 }
 0xd98   : > { %3211 = vmatpush3.bf16.msra.mxu0 %v3208_v17 }
 0xd99   : > { %3213 = vmatprep.subr.bf16.mxu0 %v3212_v21 }
 0xd9c   : > { %3215 = vmatpush3.bf16.msra.mxu0 %v3212_v21  ;;  %v2976_v21 = vld [vmem:[%s663_s1] ss:$0 sm:$0xff] }
 0xd9d   : > { %3217 = vmatprep.subr.bf16.mxu0 %v3216_v25 }
 0xda0   : > { %3219 = vmatpush3.bf16.msra.mxu0 %v3216_v25 }
 0xe66   : > { %v3149_v37 = vpop.f32.mrb[14].mxu0 }
 0xe67   : > { %v2344_v39 = vadd.f32 %v3149_v37, %v2970_v36  ;;  %v2338_v40 = vpop.f32.mrb[15].mxu0 }
 0xe68   : > { %v2339_v42 = vadd.f32 %v2970_v36, %v2338_v40 }
 0xe69   : > { %v2349_v44 = vmul.f32 %v4580_v20, %v2344_v39 }
 0xe6a   : > { %v2348_v45 = vmul.f32 %v4580_v20, %v2339_v42 }
 0xe6b   : > { %v4585_v22 = vadd.f32 %v2349_v44, %v4403_v3 }
 0xe6c   : > { %v4588_v46 = vadd.f32 %v2348_v45, %v4401_v2 }
 0xe6d   : > { %v2355_v47 = vsel %vm746_vm1, %v4585_v22, 0.0 }
 0xe6e   : > { %2356 = vadd.xlane.f32.xlu1 %v2355_v47  ;;  %v2352_v48 = vsel %vm746_vm1, %v4588_v46, 0.0 }
 0xe6f   : > { %2353 = vadd.xlane.f32.xlu0 %v2352_v48 }
 0xefb   : > { %v2357_v49 = vpop.xlane.xlu1 %2356 }
 0xefc   : > { %v2359_v51 = vmul.f32 0.03125, %v2357_v49  ;;  %v2354_v52 = vpop.xlane.xlu0 %2353 }
 0xefd   : > { %v2358_v3 = vmul.f32 0.03125, %v2354_v52 }
 0xefe   : > { %v2361_v53 = vsub.f32 %v4585_v22, %v2359_v51 }
 0xeff   : > { %v2360_v2 = vsub.f32 %v4588_v46, %v2358_v3 }
 0xf00   : > { %v2363_v56 = vmul.f32 %v2361_v53, %v2361_v53 }
 0xf01   : > { %v2362_v54 = vmul.f32 %v2360_v2, %v2360_v2 }
 0xf02   : > { %v2367_v57 = vsel %vm746_vm1, %v2363_v56, 0.0 }
 0xf03   : > { %v2364_v55 = vsel %vm746_vm1, %v2362_v54, 0.0 }
 0xf04   : > { %2365 = vadd.xlane.f32.xlu0 %v2364_v55 }
 0xf08   : > { %2368 = vadd.xlane.f32.xlu0 %v2367_v57 }
 0xf91   : > { %v2366_v63 = vpop.xlane.xlu0 %2365 }
 0xf92   : > { %v2370_v41 = vmul.f32 0.03125, %v2366_v63 }
 0xf94   : > { %v2372_v1 = vadd.f32 1e-05, %v2370_v41 }
 0xf95   : > { %v2369_v62 = vpop.xlane.xlu0 %2368 }
 0xf96   : > { %3403 = vrsqrt.f32 %v2372_v1  ;;  %v2371_v4 = vmul.f32 0.03125, %v2369_v62 }
 0xf98   : > { %v2373_v0 = vadd.f32 1e-05, %v2371_v4 }
 0xf9a   : > { %3405 = vrsqrt.f32 %v2373_v0 }
 0xfa0   : > { %v3404_v5 = vpop.eup %3403 }
 0xfa1   : > { %v2376_v6 = vmul.f32 %v3404_v5, %v2360_v2 }
 0xfa3   : > { %v2378_v7 = vmul.f32 %v4417_v29, %v2376_v6 }
 0xfa4   : > { %v3406_v8 = vpop.eup %3405 }
 0xfa5   : > { %v2377_v9 = vmul.f32 %v3406_v8, %v2361_v53  ;;  %v2380_v10 = vadd.f32 %v4419_v31, %v2378_v7 }
 0xfa7   : > { %v2379_v11 = vmul.f32 %v4417_v29, %v2377_v9  ;;  %3158 = vmatprep.mubr.msk.f32.mxu1 %vm746_vm1, %v2380_v10 }
 0xfa9   : > { %v2381_v12 = vadd.f32 %v4419_v31, %v2379_v11 }
 0xfab   : > { %3159 = vmatmul.mubr.msk.f32.vlgmr.msra.gmra.mrb[20].mxu1 %vm746_vm1, %v2381_v12 }
0x107e   : > { %v3160_v27 = vpop.f32.mrb[20].mxu1 }
0x107f   : > { %v2471_v28 = vadd.f32 %v3160_v27, %v2973_v26  ;;  %v2465_v30 = vpop.f32.mrb[21].mxu1 }
0x1080   : > { %v2466_v32 = vadd.f32 %v2973_v26, %v2465_v30 }
0x1081   : > { %v2477_v33 = vmul.f32 0.70710677, %v2471_v28  ;;  %v2475_v17 = vmul.f32 0.5, %v2471_v28 }
0x1082   : > { %v2476_v34 = vmul.f32 0.70710677, %v2466_v32  ;;  %v2474_v15 = vmul.f32 0.5, %v2466_v32 }
0x1083   : > { %v2479_v35 = vand.u32 2147483647, %v2477_v33  ;;  %vm2519_vm7 = vcmp.ge.f32.partialorder %v2477_v33, 0.0 }
0x1084   : > { %v2478_v36 = vand.u32 2147483647, %v2476_v34  ;;  %vm2518_vm8 = vcmp.ge.f32.partialorder %v2476_v34, 0.0 }
0x1085   : > { %v2481_v37 = vmul.f32 0.3275911, %v2479_v35  ;;  %v2507_v44 = vsub.f32 0.0, %v2479_v35 }
0x1086   : > { %v2480_v39 = vmul.f32 0.3275911, %v2478_v36  ;;  %v2506_v45 = vsub.f32 0.0, %v2478_v36 }
0x1087   : > { %v2483_v40 = vadd.f32 1.0, %v2481_v37  ;;  %v2509_v48 = vmul.f32 %v2507_v44, %v2479_v35 }
0x1088   : > { %v2482_v42 = vadd.f32 1.0, %v2480_v39  ;;  %v2508_v52 = vmul.f32 %v2506_v45, %v2478_v36 }
0x1089   : > { %3407 = vrcp.f32 %v2483_v40  ;;  %v2512_v2 = vmul.f32 1.442695, %v2509_v48 }
0x108a   : > { %3409 = vrcp.f32 %v2482_v42  ;;  %v2510_v56 = vmul.f32 1.442695, %v2508_v52 }
0x108b   : > { %3411 = vpow2.f32 %v2512_v2 }
0x108c   : > { %3413 = vpow2.f32 %v2510_v56 }
0x1093   : > { %v3408_v47 = vpop.eup %3407 }
0x1094   : > { %v3410_v49 = vpop.eup %3409  ;;  %v2489_v51 = vmul.f32 1.0614054, %v3408_v47 }
0x1095   : > { %v2488_v3 = vmul.f32 1.0614054, %v3410_v49  ;;  %v3412_v0 = vpop.eup %3411 }
0x1096   : > { %v2491_v53 = vadd.f32 -1.4531521, %v2489_v51  ;;  %v3414_v6 = vpop.eup %3413 }
0x1097   : > { %v2490_v54 = vadd.f32 -1.4531521, %v2488_v3 }
0x1098   : > { %v2493_v55 = vmul.f32 %v3408_v47, %v2491_v53 }
0x1099   : > { %v2492_v57 = vmul.f32 %v3410_v49, %v2490_v54 }
0x109a   : > { %v2495_v38 = vadd.f32 1.4214138, %v2493_v55 }
0x109b   : > { %v2494_v58 = vadd.f32 1.4214138, %v2492_v57 }
0x109c   : > { %v2497_v59 = vmul.f32 %v3408_v47, %v2495_v38 }
0x109d   : > { %v2496_v60 = vmul.f32 %v3410_v49, %v2494_v58 }
0x109e   : > { %v2499_v50 = vadd.f32 -0.28449672, %v2497_v59 }
0x109f   : > { %v2498_v61 = vadd.f32 -0.28449672, %v2496_v60 }
0x10a0   : > { %v2501_v63 = vmul.f32 %v3408_v47, %v2499_v50 }
0x10a1   : > { %v2500_v41 = vmul.f32 %v3410_v49, %v2498_v61 }
0x10a2   : > { %v2503_v1 = vadd.f32 0.2548296, %v2501_v63 }
0x10a3   : > { %v2502_v62 = vadd.f32 0.2548296, %v2500_v41 }
0x10a4   : > { %v2505_v4 = vmul.f32 %v3408_v47, %v2503_v1 }
0x10a5   : > { %v2504_v5 = vmul.f32 %v3410_v49, %v2502_v62 }
0x10a6   : > { %v2515_v7 = vmul.f32 %v3412_v0, %v2505_v4 }
0x10a7   : > { %v2514_v8 = vmul.f32 %v3414_v6, %v2504_v5 }
0x10a8   : > { %v2517_v9 = vsub.f32 1.0, %v2515_v7 }
0x10a9   : > { %v2516_v10 = vsub.f32 1.0, %v2514_v8 }
0x10aa   : > { %v2521_v11 = vsub.f32 0.0, %v2517_v9 }
0x10ab   : > { %v2520_v12 = vsub.f32 0.0, %v2516_v10 }
0x10ac   : > { %v2523_v43 = vsel %vm2519_vm7, %v2517_v9, %v2521_v11 }
0x10ad   : > { %v2525_v13 = vadd.f32 1.0, %v2523_v43  ;;  %v2522_v14 = vsel %vm2518_vm8, %v2516_v10, %v2520_v12 }
0x10ae   : > { %v2524_v16 = vadd.f32 1.0, %v2522_v14 }
0x10af   : > { %v2527_v19 = vmul.f32 %v2525_v13, %v2475_v17 }
0x10b0   : > { %v2526_v18 = vmul.f32 %v2524_v16, %v2474_v15 }
0x10b2   : > { %3177 = vmatprep.mubr.msk.f32.mxu0 %vm2543_vm9, %v2526_v18 }
0x10b3   : > { %3178 = vmatmul.mubr.msk.f32.vlgmr.msra.gmra.mrb[16].mxu0 %vm2543_vm9, %v2527_v19 }
0x1186   : > { %v3179_v23 = vpop.f32.mrb[16].mxu0 }
0x1187   : > { %v2622_v24 = vadd.f32 %v3179_v23, %v2976_v21  ;;  %v2616_v25 = vpop.f32.mrb[17].mxu0 }
0x1188   : > { %v2617_v26 = vadd.f32 %v2976_v21, %v2616_v25  ;;  %2634 = sbr.rel (%p2979_p9) target bundleno = 4812 (0x12cc), region = 120 }
0x1189   : > { %v2626_v27 = vmul.f32 %v2622_v24, %v4580_v20 }
0x118a   : > { %v2625_v30 = vmul.f32 %v2617_v26, %v4580_v20 }
0x118b   : > { %v2628_v33 = vadd.f32 %v2626_v27, %v4585_v22 }
0x118c   : > { %v2627_v32 = vadd.f32 %v2625_v30, %v4588_v46 }
0x118d   : > { %2630 = vst.msk [vmem:[#allocation2 + $0x8] sm:$0xff] %vm746_vm1, %v2628_v33  ;;  %v2638_v34 = vsel (!%p2979_p9), %vm746_vm1, %v2628_v33, 0.0 }
0x118e   : > { %2629 = vst.msk [vmem:[#allocation2] sm:$0xff] %vm746_vm1, %v2627_v32  ;;  %v2635_v28 = vsel (!%p2979_p9), %vm746_vm1, %v2627_v32, 0.0 }
0x118f   : > { %2636 = vadd.xlane.f32.xlu0 %v2635_v28 }
0x1193   : > { %2639 = vadd.xlane.f32.xlu0 %v2638_v34 }
0x121c   : > { %v2637_v35 = vpop.xlane.xlu0 %2636 }
0x121d   : > { %v2641_v36 = vmul.f32 0.03125, %v2637_v35 }
0x121f   : > { %v2643_v20 = vsub.f32 %v2627_v32, %v2641_v36 }
0x1220   : > { %v2640_v37 = vpop.xlane.xlu0 %2639 }
0x1221   : > { %v2642_v22 = vmul.f32 0.03125, %v2640_v37  ;;  %v2645_v39 = vmul.f32 %v2643_v20, %v2643_v20 }
0x1223   : > { %v2644_v46 = vsub.f32 %v2628_v33, %v2642_v22  ;;  %v2647_v40 = vsel %vm746_vm1, %v2645_v39, 0.0 }
0x1224   : > { %2648 = vadd.xlane.f32.xlu1 %v2647_v40 }
0x1225   : > { %v2646_v42 = vmul.f32 %v2644_v46, %v2644_v46 }
0x1227   : > { %v2650_v44 = vsel %vm746_vm1, %v2646_v42, 0.0 }
0x1228   : > { %2651 = vadd.xlane.f32.xlu1 %v2650_v44 }
0x12b1   : > { %v2649_v45 = vpop.xlane.xlu1 %2648 }
0x12b2   : > { %v2653_v47 = vmul.f32 0.03125, %v2649_v45 }
0x12b4   : > { %v2655_v48 = vadd.f32 1e-05, %v2653_v47 }
0x12b5   : > { %v2652_v49 = vpop.xlane.xlu1 %2651 }
0x12b6   : > { %3415 = vrsqrt.f32 %v2655_v48  ;;  %v2654_v51 = vmul.f32 0.03125, %v2652_v49 }
0x12b8   : > { %v2656_v52 = vadd.f32 1e-05, %v2654_v51 }
0x12ba   : > { %3417 = vrsqrt.f32 %v2656_v52 }
0x12c0   : > { %v3416_v3 = vpop.eup %3415 }
0x12c1   : > { %v2659_v53 = vmul.f32 %v3416_v3, %v2643_v20 }
0x12c3   : > { %v2661_v2 = vmul.f32 %v4417_v29, %v2659_v53 }
0x12c4   : > { %v3418_v54 = vpop.eup %3417 }
0x12c5   : > { %v2663_v55 = vadd.f32 %v4419_v31, %v2661_v2  ;;  %v2660_v56 = vmul.f32 %v3418_v54, %v2644_v46 }
0x12c7   : > { %2665 = vst.msk [vmem:[#allocation22] sm:$0xff] %vm746_vm1, %v2663_v55  ;;  %v2662_v57 = vmul.f32 %v4417_v29, %v2660_v56 }
0x12c9   : > { %v2664_v38 = vadd.f32 %v4419_v31, %v2662_v57 }
0x12cb   : > { %2666 = vst.msk [vmem:[#allocation22 + $0x8] sm:$0xff] %vm746_vm1, %v2664_v38 }
0x12cc PF: > { %s4758_s13 = sld [smem:[#allocation33_spill]]  ;;  %s3874_s26 = smov [#allocation22]  }
0x12cd   : > { %s2676_s18 = sshll.u32 %s3874_s26, 4  ;;  %s2677_s18 = int_to_ptr.vmem [resolvable:$true] %s2676_s18 }
0x12ce   : > { %s3743_s23 = scalar_lea.vmem %s2677_s18, 256  ;;  %p3750_p0 = scmp.lt.s32.totalorder %s2677_s18, %s2677_s18 }
0x12cf   : > { %p3744_p5 = scmp.ne.s32.totalorder %s2677_s18, %s3743_s23  ;;  %p3751_p12 = scmp.lt.s32.totalorder %s3743_s23, %s3743_s23 }
0x12d1   : > { %p3752_p7 = por %p3751_p12, %p3750_p0 }
0x12d2   : > { %p3294_p6 = scmp.eq.s32.totalorder %s4758_s13, 1 }
0x12d4   : > { %p3745_p8 = pnand %p3744_p5, %p3294_p6 }
0x12d6   : > { %p3746_p1 = pneg %p3745_p8 }
0x12d8   : > { %p3753_p13 = pnand %p3752_p7, %p3746_p1 }
0x12da   : > { %3756 = shalt.err (!%p3753_p13)
}
0x12db   : > { %s4759_s21 = sld [smem:[#allocation41_spill]] }
0x12e1   : > { %s3757_s17 = scalar_lea.hbm %s4759_s21, 256 }
0x12e2   : > { %p3758_p2 = scmp.ne.s32.totalorder %s4759_s21, %s3757_s17  ;;  %p3763_p10 = scmp.lt.u32.totalorder %s3757_s17, %s4759_s21 }
0x12e4   : > { %p3759_p4 = pnand %p3758_p2, %p3294_p6 }
0x12e6   : > { %p3760_p11 = pneg %p3759_p4 }
0x12e8   : > { %p3765_p3 = pnand %p3763_p10, %p3760_p11 }
0x12ea   : > { %3768 = shalt.err (!%p3765_p3)
}
0x12eb   : > { %s3875_s3 = smov 128  }
0x12ec   : > { %3249 = dma.vmem_to_hbm [thread:$0]  (%p3294_p6), %s2677_s18, 256, %s4759_s21, [#allocation6], %s3875_s3, %s3875_s3, %s3871_s19  }
0x12ed   : > { %3818 = dma.done.wait (%p3294_p6), [#allocation6], 256  }
0x12ee   : > { %3820 = vsyncadd (%p3294_p6), [#allocation6], 4294967040 }
0x12ef PF: > { %s4760_s29 = sld [smem:[#allocation32_spill]]  ;;  %s4761_s23 = sld [smem:[#allocation30_spill]] }
0x12f0   : > { %s4762_s14 = sld [smem:[#allocation37_spill]]  ;;  %s4763_s5 = sld [smem:[#allocation36_spill]] }
0x12f1   : > { %s4764_s24 = smov %s3831_s25  ;;  %s4766_s26 = smov %s3839_s11 }
0x12f5   : > { %s38_s27 = sadd.s32 1, %s4760_s29  }
0x12f6   : > { %p35_p9 = scmp.ge.s32.totalorder %s38_s27, 4   ;;  %s4765_s25 = smov %s4762_s14 }
0x12f7   : > { %s4767_s11 = smov %s4763_s5 }
0x12f8   :  { %37 = sbr.rel (!%p35_p9) target bundleno = 19 (0x13), region = 211 }
0x12ff   :  { %2692 = vsyncpa [#allocation5], 1 }
0x1300   :  { %2694 = vsyncpa [#allocation5 + $0x1], 1 }
0x1301   :  { %2695 = vsyncpa [#allocation8], 1 }
0x1302   :  { %2696 = vsyncpa [#allocation11], 1 }
0x1303   :  { %2698 = vsyncpa [#allocation11 + $0x1], 1 }
0x1304   :  { %2699 = vsyncpa [#allocation14], 1 }
0x1305   :  { %2701 = vsyncpa [#allocation14 + $0x1], 1 }
0x1306   :  { %2702 = vsyncpa [#allocation17], 1 }
0x1307   :  { %2704 = vsyncpa [#allocation17 + $0x1], 1 }
0x1308   :  { %2705 = vsyncpa [#allocation20], 1 }
0x1309   :  { %2707 = vsyncpa [#allocation20 + $0x1], 1 }
0x130a   :  { %2708 = vsyncpa [#allocation6], 1 }
0x130b   :  { %2710 = vsyncpa [#allocation6 + $0x1], 1 }

</bundles_post_ra>
